<compile_context>
chip_gen: v7x
topology: tpu7x:2x2x1
jax: 0.10.0
libtpu: 0.0.40
codegen_flags: <defaults>
</compile_context>

<pallas_src>
import functools

import jax
import jax.numpy as jnp
from jax import lax
from jax.experimental import pallas as pl
from jax.experimental.pallas import tpu as pltpu


def _voxels_kernel(xyz_ref, vox_ref, out_ref, *, nb_voxels, scale, n_points):
    V = nb_voxels
    tile = xyz_ref.shape[1]

    xyz = xyz_ref[...]                        # (3, tile) f32, points on lanes
    x = xyz[0:1, :]
    y = xyz[1:2, :]
    z = xyz[2:3, :]

    half = scale / 2.0
    col = (pl.program_id(0) * tile
           + lax.broadcasted_iota(jnp.int32, (1, tile), 1))
    valid = ((jnp.abs(x) < half) & (jnp.abs(y) < half) & (jnp.abs(z) < half)
             & (col < n_points))              # (1, tile) bool

    cell = scale / float(V)                   # scale / nb_voxels, as in torch
    offs = float(V) / 2.0
    # In-range points land in (0, V); int32 truncation == torch .long().
    # Out-of-range / padded columns are clamped and masked out below.
    ix = jnp.clip(x / cell + offs, 0.0, float(V - 1)).astype(jnp.int32)
    iy = jnp.clip(y / cell + offs, 0.0, float(V - 1)).astype(jnp.int32)
    iz = jnp.clip(z / cell + offs, 0.0, float(V - 1)).astype(jnp.int32)

    # ---- Stage 1: gather the (ix, iy) plane via a one-hot MXU matmul ------
    # one-hot is (V^2, tile): rows = linear (ix, iy) index, lanes = points.
    lin_xy = ix * V + iy                                       # (1, tile)
    row_xy = lax.broadcasted_iota(jnp.int32, (V * V, 1), 0)    # tiny iota
    onehot_t = (row_xy == lin_xy).astype(jnp.float32)          # (V^2, tile)
    # Table rows are (c*V + iz), columns are (ix*V + iy).
    plane_t = jnp.dot(vox_ref[...], onehot_t,
                      preferred_element_type=jnp.float32)       # (4V, tile)

    # ---- Stage 2: select the iz slot per channel (mask + sublane reduce) --
    row_z = lax.broadcasted_iota(jnp.int32, (V, 1), 0)
    zsel = (row_z == iz).astype(jnp.float32)                   # (V, tile)
    parts = []
    for c in range(4):
        chan = plane_t[c * V:(c + 1) * V, :]                   # (V, tile)
        parts.append(jnp.sum(chan * zsel, axis=0, keepdims=True))  # (1, tile)
    gathered = jnp.concatenate(parts, axis=0)                  # (4, tile)

    # Rows with cond == False stay 0 pre-activation (torch zeros init), so
    # their colors become sigmoid(0)=0.5 and density relu(0)=0, like torch.
    vals = jnp.where(valid, gathered, 0.0)
    row_c = lax.broadcasted_iota(jnp.int32, (4, 1), 0)
    out_ref[...] = jnp.where(row_c < 3,
                             jax.nn.sigmoid(vals),
                             jnp.maximum(vals, 0.0))


def voxels_forward(xyz, d, voxels, *, scale=1.0, tile=None):
    """Pallas equivalent of Voxels.forward(xyz, d). `d` is unused (as in torch)."""
    del d
    N = xyz.shape[0]
    V = voxels.shape[0]
    if tile is None:
        # Larger tiles amortize the ~0.35us/step overhead; shrink as V grows
        # so the (V^2, tile) one-hot temp stays VMEM-friendly.
        tile = 1024 if V <= 32 else (512 if V <= 64 else 256)

    # Points-on-lanes layout: (N, 3) -> (3, N).
    xyz_t = xyz.astype(jnp.float32).T
    # (V, V, V, 4) -> (4*V, V^2): row = c*V + iz, col = ix*V + iy.
    table_t = jnp.transpose(voxels.astype(jnp.float32),
                            (3, 2, 0, 1)).reshape(4 * V, V * V)

    grid = (pl.cdiv(N, tile),)

    table_bytes = 4 * V * V * V * 4
    onehot_bytes = V * V * tile * 4
    plane_bytes = 4 * V * tile * 4
    io_bytes = 2 * (3 * tile * 4 + 4 * tile * 4)   # double-buffered xyz / out
    vmem_limit = int(min(60 << 20,
                         max(32 << 20,
                             2 * table_bytes + onehot_bytes + plane_bytes
                             + io_bytes + (4 << 20))))

    kernel = functools.partial(_voxels_kernel, nb_voxels=V,
                               scale=float(scale), n_points=N)

    out = pl.pallas_call(
        kernel,
        out_shape=jax.ShapeDtypeStruct((4, N), jnp.float32),
        grid=grid,
        in_specs=[pl.BlockSpec((3, tile), lambda i: (0, i)),
                  # Table: full-array block, constant index -> resident in
                  # VMEM, DMA'd once, works under megacore "parallel".
                  pl.BlockSpec((4 * V, V * V), lambda i: (0, 0))],
        out_specs=pl.BlockSpec((4, tile), lambda i: (0, i)),
        compiler_params=pltpu.CompilerParams(
            dimension_semantics=("parallel",),
            vmem_limit_bytes=vmem_limit),
    )(xyz_t, table_t)

    # (4, N) -> colors (N, 3), density (N, 1).
    return out[:3, :].T, out[3:4, :].T


def _reference_forward(xyz, voxels, scale=1.0):
    """Pure-JAX reference mirroring the PyTorch semantics."""
    V = voxels.shape[0]
    x, y, z = xyz[:, 0], xyz[:, 1], xyz[:, 2]
    half = scale / 2.0
    cond = (jnp.abs(x) < half) & (jnp.abs(y) < half) & (jnp.abs(z) < half)
    cell = scale / float(V)
    offs = float(V) / 2.0
    ix = jnp.clip(x / cell + offs, 0.0, float(V - 1)).astype(jnp.int32)
    iy = jnp.clip(y / cell + offs, 0.0, float(V - 1)).astype(jnp.int32)
    iz = jnp.clip(z / cell + offs, 0.0, float(V - 1)).astype(jnp.int32)
    gathered = voxels[ix, iy, iz]                      # (N, 4)
    vals = jnp.where(cond[:, None], gathered, 0.0)
    return jax.nn.sigmoid(vals[:, :3]), jnp.maximum(vals[:, 3:4], 0.0)


if __name__ == "__main__":
    key = jax.random.PRNGKey(0)
    k_vox, k_xyz, k_d = jax.random.split(key, 3)

    nb_voxels = 16          # small synthetic grid (torch default is 100)
    scale = 1.0
    N = 2500                # multiple grid steps + a ragged boundary tile

    # Deterministic parameter init (torch.rand -> uniform [0, 1)).
    voxels = jax.random.uniform(k_vox, (nb_voxels, nb_voxels, nb_voxels, 4),
                                dtype=jnp.float32)
    # Points: some inside the [-scale/2, scale/2]^3 cube, some outside.
    xyz = jax.random.uniform(k_xyz, (N, 3), dtype=jnp.float32,
                             minval=-0.75, maxval=0.75)
    d = jax.random.uniform(k_d, (N, 3), dtype=jnp.float32)   # unused by forward

    colors, density = voxels_forward(xyz, d, voxels, scale=scale)
    jax.block_until_ready((colors, density))

    ref_colors, ref_density = _reference_forward(xyz, voxels, scale=scale)
    assert colors.shape == (N, 3) and density.shape == (N, 1)
    assert jnp.max(jnp.abs(colors - ref_colors)) < 1e-5
    assert jnp.max(jnp.abs(density - ref_density)) < 1e-5

    print("KERNEL_OK")
</pallas_src>

<mosaic_0001>
module attributes {stable_mosaic.version = 11 : i64} {
  func.func @_voxels_kernel(%arg0: i32, %arg1: memref<3x1024xf32, #tpu.memory_space<vmem>>, %arg2: memref<64x256xf32, #tpu.memory_space<vmem>>, %arg3: memref<4x1024xf32, #tpu.memory_space<vmem>>) attributes {dimension_semantics = [#tpu.dimension_semantics<parallel>], iteration_bounds = array<i64: 3>, scalar_prefetch = 0 : i64, scratch_operands = 0 : i64, tpu.core_type = #tpu.core_type<tc>, window_params = [{transform_indices = @transform_0, window_bounds = array<i64: 3, 1024>}, {pipeline_mode = #tpu.pipeline_mode<synchronous>, transform_indices = @transform_1, window_bounds = array<i64: 64, 256>}, {transform_indices = @transform_2, window_bounds = array<i64: 4, 1024>}]} {
    %c0 = arith.constant 0 : index
    %c0_0 = arith.constant 0 : index
    %0 = vector.load %arg1[%c0, %c0_0] : memref<3x1024xf32, #tpu.memory_space<vmem>>, vector<3x1024xf32>
    %1 = vector.extract_strided_slice %0 {offsets = [0, 0], sizes = [1, 1024], strides = [1, 1]} : vector<3x1024xf32> to vector<1x1024xf32>
    %2 = vector.extract_strided_slice %0 {offsets = [1, 0], sizes = [1, 1024], strides = [1, 1]} : vector<3x1024xf32> to vector<1x1024xf32>
    %3 = vector.extract_strided_slice %0 {offsets = [2, 0], sizes = [1, 1024], strides = [1, 1]} : vector<3x1024xf32> to vector<1x1024xf32>
    %c1024_i32 = arith.constant 1024 : i32
    %4 = arith.muli %arg0, %c1024_i32 : i32
    %5 = tpu.iota {dimensions = array<i32: 1>} : vector<1x1024xi32>
    %6 = vector.broadcast %4 : i32 to vector<1x1024xi32>
    %7 = arith.addi %6, %5 : vector<1x1024xi32>
    %8 = math.absf %1 : vector<1x1024xf32>
    %cst = arith.constant 5.000000e-01 : f32
    %9 = vector.broadcast %cst : f32 to vector<1x1024xf32>
    %10 = arith.cmpf olt, %8, %9 : vector<1x1024xf32>
    %11 = math.absf %2 : vector<1x1024xf32>
    %cst_1 = arith.constant 5.000000e-01 : f32
    %12 = vector.broadcast %cst_1 : f32 to vector<1x1024xf32>
    %13 = arith.cmpf olt, %11, %12 : vector<1x1024xf32>
    %14 = arith.andi %10, %13 : vector<1x1024xi1>
    %15 = math.absf %3 : vector<1x1024xf32>
    %cst_2 = arith.constant 5.000000e-01 : f32
    %16 = vector.broadcast %cst_2 : f32 to vector<1x1024xf32>
    %17 = arith.cmpf olt, %15, %16 : vector<1x1024xf32>
    %18 = arith.andi %14, %17 : vector<1x1024xi1>
    %c2500_i32 = arith.constant 2500 : i32
    %19 = vector.broadcast %c2500_i32 : i32 to vector<1x1024xi32>
    %20 = arith.cmpi slt, %7, %19 : vector<1x1024xi32>
    %21 = arith.andi %18, %20 : vector<1x1024xi1>
    %cst_3 = arith.constant 6.250000e-02 : f32
    %22 = vector.broadcast %cst_3 : f32 to vector<1x1024xf32>
    %23 = arith.divf %1, %22 : vector<1x1024xf32>
    %cst_4 = arith.constant 8.000000e+00 : f32
    %24 = vector.broadcast %cst_4 : f32 to vector<1x1024xf32>
    %25 = arith.addf %23, %24 : vector<1x1024xf32>
    %cst_5 = arith.constant 0.000000e+00 : f32
    %cst_6 = arith.constant 1.500000e+01 : f32
    %26 = vector.broadcast %cst_5 : f32 to vector<1x1024xf32>
    %27 = arith.maximumf %26, %25 : vector<1x1024xf32>
    %28 = vector.broadcast %cst_6 : f32 to vector<1x1024xf32>
    %29 = arith.minimumf %28, %27 : vector<1x1024xf32>
    %30 = arith.fptosi %29 : vector<1x1024xf32> to vector<1x1024xi32>
    %cst_7 = arith.constant 6.250000e-02 : f32
    %31 = vector.broadcast %cst_7 : f32 to vector<1x1024xf32>
    %32 = arith.divf %2, %31 : vector<1x1024xf32>
    %cst_8 = arith.constant 8.000000e+00 : f32
    %33 = vector.broadcast %cst_8 : f32 to vector<1x1024xf32>
    %34 = arith.addf %32, %33 : vector<1x1024xf32>
    %cst_9 = arith.constant 0.000000e+00 : f32
    %cst_10 = arith.constant 1.500000e+01 : f32
    %35 = vector.broadcast %cst_9 : f32 to vector<1x1024xf32>
    %36 = arith.maximumf %35, %34 : vector<1x1024xf32>
    %37 = vector.broadcast %cst_10 : f32 to vector<1x1024xf32>
    %38 = arith.minimumf %37, %36 : vector<1x1024xf32>
    %39 = arith.fptosi %38 : vector<1x1024xf32> to vector<1x1024xi32>
    %cst_11 = arith.constant 6.250000e-02 : f32
    %40 = vector.broadcast %cst_11 : f32 to vector<1x1024xf32>
    %41 = arith.divf %3, %40 : vector<1x1024xf32>
    %cst_12 = arith.constant 8.000000e+00 : f32
    %42 = vector.broadcast %cst_12 : f32 to vector<1x1024xf32>
    %43 = arith.addf %41, %42 : vector<1x1024xf32>
    %cst_13 = arith.constant 0.000000e+00 : f32
    %cst_14 = arith.constant 1.500000e+01 : f32
    %44 = vector.broadcast %cst_13 : f32 to vector<1x1024xf32>
    %45 = arith.maximumf %44, %43 : vector<1x1024xf32>
    %46 = vector.broadcast %cst_14 : f32 to vector<1x1024xf32>
    %47 = arith.minimumf %46, %45 : vector<1x1024xf32>
    %48 = arith.fptosi %47 : vector<1x1024xf32> to vector<1x1024xi32>
    %c16_i32 = arith.constant 16 : i32
    %49 = vector.broadcast %c16_i32 : i32 to vector<1x1024xi32>
    %50 = arith.muli %30, %49 : vector<1x1024xi32>
    %51 = arith.addi %50, %39 : vector<1x1024xi32>
    %52 = tpu.iota {dimensions = array<i32: 0>} : vector<256x1xi32>
    %53 = vector.broadcast %52 : vector<256x1xi32> to vector<256x1024xi32>
    %54 = vector.broadcast %51 : vector<1x1024xi32> to vector<256x1024xi32>
    %55 = arith.cmpi eq, %53, %54 : vector<256x1024xi32>
    %56 = arith.extui %55 : vector<256x1024xi1> to vector<256x1024xi32>
    %57 = arith.sitofp %56 : vector<256x1024xi32> to vector<256x1024xf32>
    %c0_15 = arith.constant 0 : index
    %c0_16 = arith.constant 0 : index
    %58 = vector.load %arg2[%c0_15, %c0_16] : memref<64x256xf32, #tpu.memory_space<vmem>>, vector<64x256xf32>
    %cst_17 = arith.constant dense<0.000000e+00> : vector<64x1024xf32>
    %59 = tpu.matmul %58, %57, %cst_17 {dimension_numbers = #tpu.dot_dimension_numbers<[1], [0], [0], [1], [0, 0, 1, 1], [], []>} : vector<64x256xf32>, vector<256x1024xf32>, vector<64x1024xf32> -> vector<64x1024xf32>
    %60 = tpu.iota {dimensions = array<i32: 0>} : vector<16x1xi32>
    %61 = vector.broadcast %60 : vector<16x1xi32> to vector<16x1024xi32>
    %62 = vector.broadcast %48 : vector<1x1024xi32> to vector<16x1024xi32>
    %63 = arith.cmpi eq, %61, %62 : vector<16x1024xi32>
    %64 = arith.extui %63 : vector<16x1024xi1> to vector<16x1024xi32>
    %65 = arith.sitofp %64 : vector<16x1024xi32> to vector<16x1024xf32>
    %66 = vector.extract_strided_slice %59 {offsets = [0, 0], sizes = [16, 1024], strides = [1, 1]} : vector<64x1024xf32> to vector<16x1024xf32>
    %67 = arith.mulf %66, %65 : vector<16x1024xf32>
    %cst_18 = arith.constant dense<0.000000e+00> : vector<1024xf32>
    %68 = vector.multi_reduction <add>, %67, %cst_18 [0] : vector<16x1024xf32> to vector<1024xf32>
    %69 = vector.shape_cast %68 : vector<1024xf32> to vector<1x1024xf32>
    %70 = vector.extract_strided_slice %59 {offsets = [16, 0], sizes = [16, 1024], strides = [1, 1]} : vector<64x1024xf32> to vector<16x1024xf32>
    %71 = arith.mulf %70, %65 : vector<16x1024xf32>
    %cst_19 = arith.constant dense<0.000000e+00> : vector<1024xf32>
    %72 = vector.multi_reduction <add>, %71, %cst_19 [0] : vector<16x1024xf32> to vector<1024xf32>
    %73 = vector.shape_cast %72 : vector<1024xf32> to vector<1x1024xf32>
    %74 = vector.extract_strided_slice %59 {offsets = [32, 0], sizes = [16, 1024], strides = [1, 1]} : vector<64x1024xf32> to vector<16x1024xf32>
    %75 = arith.mulf %74, %65 : vector<16x1024xf32>
    %cst_20 = arith.constant dense<0.000000e+00> : vector<1024xf32>
    %76 = vector.multi_reduction <add>, %75, %cst_20 [0] : vector<16x1024xf32> to vector<1024xf32>
    %77 = vector.shape_cast %76 : vector<1024xf32> to vector<1x1024xf32>
    %78 = vector.extract_strided_slice %59 {offsets = [48, 0], sizes = [16, 1024], strides = [1, 1]} : vector<64x1024xf32> to vector<16x1024xf32>
    %79 = arith.mulf %78, %65 : vector<16x1024xf32>
    %cst_21 = arith.constant dense<0.000000e+00> : vector<1024xf32>
    %80 = vector.multi_reduction <add>, %79, %cst_21 [0] : vector<16x1024xf32> to vector<1024xf32>
    %81 = vector.shape_cast %80 : vector<1024xf32> to vector<1x1024xf32>
    %82 = tpu.concatenate %69, %73, %77, %81 in 0 : vector<1x1024xf32>, vector<1x1024xf32>, vector<1x1024xf32>, vector<1x1024xf32> -> vector<4x1024xf32>
    %cst_22 = arith.constant 0.000000e+00 : f32
    %83 = vector.shape_cast %21 : vector<1x1024xi1> to vector<1x1024xi1>
    %84 = vector.broadcast %83 : vector<1x1024xi1> to vector<4x1024xi1>
    %85 = vector.broadcast %cst_22 : f32 to vector<4x1024xf32>
    %86 = arith.select %84, %82, %85 : vector<4x1024xi1>, vector<4x1024xf32>
    %87 = tpu.iota {dimensions = array<i32: 0>} : vector<4x1xi32>
    %c3_i32 = arith.constant 3 : i32
    %88 = vector.broadcast %c3_i32 : i32 to vector<4x1xi32>
    %89 = arith.cmpi slt, %87, %88 : vector<4x1xi32>
    %90 = arith.negf %86 : vector<4x1024xf32>
    %91 = math.exp %90 : vector<4x1024xf32>
    %cst_23 = arith.constant 1.000000e+00 : f32
    %92 = vector.broadcast %cst_23 : f32 to vector<4x1024xf32>
    %93 = arith.addf %92, %91 : vector<4x1024xf32>
    %94 = arith.divf %92, %93 : vector<4x1024xf32>
    %cst_24 = arith.constant 0.000000e+00 : f32
    %95 = vector.broadcast %cst_24 : f32 to vector<4x1024xf32>
    %96 = arith.maximumf %86, %95 : vector<4x1024xf32>
    %97 = vector.shape_cast %89 : vector<4x1xi1> to vector<4x1xi1>
    %98 = vector.broadcast %97 : vector<4x1xi1> to vector<4x1024xi1>
    %99 = arith.select %98, %94, %96 : vector<4x1024xi1>, vector<4x1024xf32>
    %c0_25 = arith.constant 0 : index
    %c0_26 = arith.constant 0 : index
    %100 = vector.load %arg3[%c0_25, %c0_26] : memref<4x1024xf32, #tpu.memory_space<vmem>>, vector<4x1024xf32>
    tpu.vector_store %arg3[%c0_25, %c0_26], %99 {strides = array<i32>} : memref<4x1024xf32, #tpu.memory_space<vmem>>, vector<4x1024xf32>,
    return
  }
  func.func @transform_0(%arg0: i32) -> (i32, i32) {
    %c0_i32 = arith.constant 0 : i32
    %c0_i32_0 = arith.constant 0 : i32
    return %c0_i32, %arg0 : i32, i32
  }
  func.func @transform_1(%arg0: i32) -> (i32, i32) {
    %c0_i32 = arith.constant 0 : i32
    %c0_i32_0 = arith.constant 0 : i32
    %c0_i32_1 = arith.constant 0 : i32
    return %c0_i32, %c0_i32_0 : i32, i32
  }
  func.func @transform_2(%arg0: i32) -> (i32, i32) {
    %c0_i32 = arith.constant 0 : i32
    %c0_i32_0 = arith.constant 0 : i32
    return %c0_i32, %arg0 : i32, i32
  }
}

</mosaic_0001>

<bundles_post_ra>
// kernel: tpu_custom_call.1
= control target key start
LH: loop header
LB: loop body
LE: loop exit
PB: predicated region body
PF: predicated region fallthrough
CT: control target
= control target key end

     0   :  { %7 = vsyncpa [#allocation3], 0  ;;  %s5104_s0 = inlined_call_operand.hbm [shape: f32[3,2500], index: 0, kind: input, shape index: {}]   ;;  %s5105_s1 = inlined_call_operand.hbm [shape: f32[64,256], index: 1, kind: input, shape index: {}]   ;;  %s5106_s2 = inlined_call_operand.hbm [shape: f32[4,2500], index: 2, kind: output, shape index: {}]  }
   0x1   :  { %9 = vsyncpa [#allocation3 + $0x1], 0 }
   0x2   :  { %10 = vsyncpa [#allocation6], 0 }
   0x3   :  { %11 = vsyncpa [#allocation4], 0 }
   0x4   :  { %13 = vsyncpa [#allocation4 + $0x1], 0  ;;  %s3437_s9 = smov 0   ;;  %s3439_s10 = smov 0  }
   0x5   :  { %s3441_s11 = smov 0   ;;  %s3443_s12 = smov 0  }
   0x6 LB: > { %s3458_s13 = sadd.s32 4294967295, %s3412_s12   ;;  %s2355_s14 = sadd.s32 4294967294, %s3412_s12   ;;  %s3412_s12 = sphi %s3443_s12, %s5177_s12   ;;  %s3408_s11 = sphi %s3441_s11, %s5176_s11   ;;  %s3404_s10 = sphi %s3439_s10, %s5175_s10   ;;  %s3400_s9 = sphi %s3437_s9, %s5174_s9  }
   0x7   : > { %s3462_s15 = sadd.s32 1, %s3412_s12   ;;  %s26_s16 = sadd.s32 1, %s3408_s11 }
   0x8   : > { %s23_s17 = ssub.s32 %s3412_s12, %s3462_s15  ;;  %p33_p0 = scmp.ne.s32.totalorder %s3408_s11, %s3404_s10 }
   0x9   : > { %p24_p1 = scmp.eq.s32.totalorder %s23_s17, 0  ;;  %p34_p2 = scmp.eq.s32.totalorder %s3412_s12, 0 }
   0xa   : > { %p39_p3 = scmp.ne.s32.totalorder %s3404_s10, %s3400_s9  ;;  %p5107_p4 = scmp.eq.s32.totalorder %s3458_s13, 0 }
   0xb   : > { %s3474_s18 = scalar_select %p24_p1, %s3408_s11, %s26_s16  }
   0xc   : > { %p3476_p5 = por %p34_p2, %p33_p0  ;;  %p3482_p6 = por %p5107_p4, %p39_p3 }
   0xd   : > { %p84_p7 = scmp.eq.s32.totalorder %s3458_s13, 2  ;;  %p90_p8 = scmp.eq.s32.totalorder %s2355_s14, 2 }
   0xe   : > { %s5113_s19 = scalar_select %p3476_p5, 1, 0 }
   0xf   : > { %s5114_s20 = scalar_select %p3482_p6, 1, 0 }
  0x10   : > { %p2356_p9 = scmp.ge.s32.totalorder %s3412_s12, 1  ;;  %p97_p10 = scmp.lt.s32.totalorder %s3412_s12, 4 }
  0x11   : > { %p3489_p11 = por %p84_p7, %p33_p0  ;;  %p3493_p12 = por %p90_p8, %p39_p3 }
  0x12   : > { %p3497_p13 = pnand %p2356_p9, %p97_p10  ;;  %s3414_s24 = smov [#allocation5]  }
  0x13   : > { %s5115_s21 = scalar_select %p3489_p11, 1, 0 }
  0x14   : > { %s5116_s22 = scalar_select %p3493_p12, 1, 0 }
  0x15   : > { %s5117_s23 = scalar_select %p3497_p13, 1, 0 }
  0x16   : > { %p3200_p1 = pneg %p3497_p13  ;;  %s109_s25 = sshll.u32 %s3414_s24, 4  ;;  %s110_s25 = int_to_ptr.vmem [resolvable:$true] %s109_s25 }
  0x17   : > { %s3286_s29 = scalar_lea.hbm %s5105_s1, 2048 }
  0x18   : > { %p3505_p2 = pnand %p3200_p1, %p5107_p4  ;;  %p3287_p0 = scmp.ne.s32.totalorder %s5105_s1, %s3286_s29 }
  0x19   : > { %p3293_p9 = scmp.lt.u32.totalorder %s3286_s29, %s5105_s1 }
  0x1a   : > { %p3288_p3 = pneg %p3505_p2 }
  0x1c   : > { %p3289_p7 = pnand %p3288_p3, %p3287_p0 }
  0x1e   : > { %p3290_p8 = pneg %p3289_p7 }
  0x20   : > { %p3295_p10 = pnand %p3293_p9, %p3290_p8 }
  0x22   : > { %3298 = shalt.err (!%p3295_p10)
}
  0x23   : > { %s3299_s6 = scalar_lea.vmem %s110_s25, 2048  ;;  %p3307_p11 = scmp.lt.s32.totalorder %s110_s25, %s110_s25 }
  0x24   : > { %p3300_p1 = scmp.ne.s32.totalorder %s110_s25, %s3299_s6  ;;  %p3308_p6 = scmp.lt.s32.totalorder %s3299_s6, %s3299_s6 }
  0x26   : > { %p3302_p4 = pnand %p3300_p1, %p3288_p3  ;;  %p3309_p13 = por %p3308_p6, %p3307_p11 }
  0x28   : > { %p3303_p12 = pneg %p3302_p4 }
  0x2a   : > { %p3310_p5 = pnand %p3309_p13, %p3303_p12 }
  0x2c   : > { %3313 = shalt.err (!%p3310_p5)
}
  0x2d   : > { %s3415_s7 = smov 256   ;;  %s3416_s8 = smov 16  }
  0x2e   : > { %3203 = dma.hbm_to_vmem [thread:$0]  (!%p3505_p2), %s5105_s1, 2048, %s110_s25, [#allocation6], %s3415_s7, %s3415_s7, %s3416_s8  }
  0x2f   : > { %p2358_p0 = scmp.ge.s32.totalorder %s3412_s12, 3 }
  0x30   : > { %p5119_p7 = scmp.ne.s32.totalorder (!%p2358_p0), %s5113_s19, 0 }
  0x31   : > { %119 = sbr.rel (%p2358_p0) target bundleno = 90 (0x5a), region = 20 }
  0x38   : > { %122 = sbr.rel (!%p5119_p7) target bundleno = 90 (0x5a), region = 24  ;;  %s123_s17 = sand.u32 (%p5119_p7), 1, %s3408_s11  }
  0x39   : > { %s2360_s24 = sshll.u32 (%p5119_p7), %s3412_s12, 3  ;;  %s2359_s27 = sshll.u32 (%p5119_p7), %s123_s17, 5 }
  0x3a   : > { %s129_s28 = ssub.s32 (%p5119_p7), 20, %s2360_s24  ;;  %s3533_s30 = scalar_lea.sflag (%p5119_p7), [#allocation3], %s123_s17 }
  0x3b   : > { %p130_p4 = scmp.lt.s32.totalorder (%p5119_p7), %s129_s28, 8  ;;  %s127_s25 = scalar_lea.vmem (%p5119_p7), [#allocation2], %s2359_s27 }
  0x3f   : > { %s5179_s28 = smov (!%p130_p4, %s129_s28), 8 }
  0x40   : > { %s3530_s29 = sshll.u32 %s5179_s28, 6 }
  0x41   : > { %s134_s26 = ssub.s32 512, %s3530_s29 }
  0x42   : > { %135 = vsyncadd %s3533_s30, %s134_s26  ;;  %p2362_p5 = scmp.ne.s32.totalorder %s3530_s29, 0  ;;  %s2928_s19 = sshll.u32 %s3412_s12, 9 }
  0x43   : > { %s3541_s5 = scalar_lea.hbm %s5104_s0, %s2928_s19  ;;  %s141_s6 = sshll.u32 %s127_s25, 4  ;;  %s142_s6 = int_to_ptr.vmem [resolvable:$true] %s141_s6 }
  0x44   : > { %s3314_s7 = scalar_lea.hbm %s3541_s5, %s3530_s29  ;;  %s3318_s16 = scalar_lea.hbm %s5104_s0, 1280 }
  0x45   : > { %p3315_p6 = scmp.ne.s32.totalorder %s3541_s5, %s3314_s7  ;;  %p3319_p13 = scmp.lt.u32.totalorder %s3541_s5, %s5104_s0 }
  0x46   : > { %p3320_p2 = scmp.lt.u32.totalorder %s3318_s16, %s3314_s7  ;;  %p3322_p8 = scmp.lt.u32.totalorder %s3314_s7, %s3541_s5 }
  0x47   : > { %p3316_p11 = pnand %p3315_p6, %p2362_p5 }
  0x48   : > { %p3321_p3 = por %p3320_p2, %p3319_p13 }
  0x49   : > { %p3317_p12 = pneg %p3316_p11 }
  0x4a   : > { %p3323_p9 = por %p3322_p8, %p3321_p3 }
  0x4c   : > { %p3324_p10 = pnand %p3323_p9, %p3317_p12 }
  0x4e   : > { %3327 = shalt.err (!%p3324_p10)
}
  0x4f   : > { %s3328_s27 = scalar_lea.vmem %s142_s6, %s3530_s29  ;;  %s3417_s28 = smov [#allocation2]  }
  0x50   : > { %p3329_p1 = scmp.ne.s32.totalorder %s142_s6, %s3328_s27  ;;  %s3332_s26 = sshll.u32 %s3417_s28, 4  ;;  %s3333_s26 = int_to_ptr.vmem [resolvable:$false] %s3332_s26 }
  0x51   : > { %s3334_s25 = scalar_lea.vmem %s3333_s26, 1024  ;;  %p3335_p4 = scmp.lt.s32.totalorder %s142_s6, %s3333_s26 }
  0x52   : > { %p3330_p0 = pnand %p3329_p1, %p2362_p5  ;;  %p3336_p6 = scmp.lt.s32.totalorder %s3334_s25, %s3328_s27 }
  0x54   : > { %p3331_p7 = pneg %p3330_p0  ;;  %p3337_p11 = por %p3336_p6, %p3335_p4 }
  0x56   : > { %p3338_p2 = pnand %p3337_p11, %p3331_p7 }
  0x58   : > { %3341 = shalt.err (!%p3338_p2)
}
  0x59   : > { %144 = dma.hbm_to_vmem [thread:$0]  (%p2362_p5), %s3541_s5, %s3530_s29, %s142_s6, %s3533_s30  }
  0x5a PF: > { %p5120_p12 = scmp.ne.s32.totalorder %s5117_s23, 0 }
  0x5b   : > { %s3567_s19 = sand.u32 (!%p5120_p12), 1, %s3404_s10   ;;  %p5121_p13 = scmp.ne.s32.totalorder (!%p5120_p12), %s5114_s20, 0 }
  0x5c   : > { %150 = sbr.rel (%p5120_p12) target bundleno = 579 (0x243), region = 28  ;;  %s2367_s3 = sshll.u32 (!%p5120_p12), %s3567_s19, 5 }
  0x5d   : > { %s153_s4 = scalar_lea.sflag (!%p5120_p12), [#allocation3], %s3567_s19  ;;  %s3573_s7 = scalar_lea.vmem (!%p5120_p12), [#allocation2], %s2367_s3 }
  0x63   : > { %3387 = dma.done.wait (%p5121_p13), %s153_s4, 512  }
  0x64   : > { %3389 = vsyncadd (%p5121_p13), %s153_s4, 4294966784  ;;  %p5122_p5 = scmp.eq.s32.totalorder %s3458_s13, 0 }
  0x66   : > { %3391 = dma.done.wait (%p5122_p5), [#allocation6], 2048   ;;  %p5123_p3 = pmov %p5122_p5 }
  0x67   : > { %v191_v0 = vld [vmem:[%s3573_s7] sm:$0x77]  ;;  %v192_v1 = vld [vmem:[%s3573_s7 + $0x8] sm:$0x77]  ;;  %v196_v7 = vlaneseq  ;;  %v3418_v36 = vmov 1.0|1.0  }
  0x68   : > { %3393 = vsyncadd (%p5123_p3), [#allocation6], 4294965248  ;;  %v287_v2 = vmul.f32 16.0, %v191_v0  ;;  %v288_v3 = vmul.f32 16.0, %v192_v1  ;;  %v1189_v4 = vld [vmem:[#allocation5 + $0x8] sm:$0xff]  ;;  %s2370_s20 = sshll.u32 %s3458_s13, 10 }
  0x69   : > { %1268 = vmatprep.mubr.f32.mxu0 %v1189_v4  ;;  %1381 = vmatprep.mubr.f32.mxu1 %v1189_v4  ;;  %v3586_v12 = vshrl.u32 %v196_v7, 7  ;;  %v193_v47 = vld [vmem:[%s3573_s7 + $0x10] sm:$0x77]  ;;  %v194_v48 = vld [vmem:[%s3573_s7 + $0x18] sm:$0x77]  ;;  %s4986_s23 = scalar_lea.vmem [#allocation7], %s2367_s3 }
  0x6a   : > { %v291_v5 = vadd.f32 8.0, %v287_v2  ;;  %v292_v6 = vadd.f32 8.0, %v288_v3  ;;  %v289_v51 = vmul.f32 16.0, %v193_v47  ;;  %v290_v52 = vmul.f32 16.0, %v194_v48  ;;  %s2255_s29 = scalar_lea.sflag [#allocation4], %s3567_s19  ;;  %p5172_p8 = scmp.ne.s32.totalorder %s5115_s21, 0 }
  0x6b   : > { %v3593_v17 = vsub.s32 0, %v3586_v12  ;;  %v3596_v18 = vsub.s32 4, %v3586_v12  ;;  %v3603_v25 = vadd.s32 8, %v3586_v12  ;;  %v3610_v30 = vadd.s32 16, %v3586_v12  ;;  %s2920_s30 = sshll.u32 (%p5172_p8), %s3458_s13, 3 }
  0x6c   : > { %v295_v8 = vmax.f32 %v291_v5, 0.0  ;;  %v296_v9 = vmax.f32 %v292_v6, 0.0  ;;  %v3613_v31 = vadd.s32 24, %v3586_v12  ;;  %v3649_v37 = vadd.s32 32, %v3586_v12  ;;  %s2263_s5 = ssub.s32 (%p5172_p8), 20, %s2920_s30 }
  0x6d   : > { %v3652_v38 = vadd.s32 40, %v3586_v12  ;;  %v3675_v39 = vadd.s32 48, %v3586_v12  ;;  %v3678_v40 = vadd.s32 56, %v3586_v12  ;;  %v3701_v41 = vadd.s32 64, %v3586_v12  ;;  %p2264_p9 = scmp.lt.s32.totalorder (%p5172_p8), %s2263_s5, 8 }
  0x6e   : > { %v299_v10 = vmin.f32 %v295_v8, 15.0  ;;  %v300_v11 = vmin.f32 %v296_v9, 15.0  ;;  %v3704_v42 = vadd.s32 72, %v3586_v12  ;;  %v3727_v43 = vadd.s32 80, %v3586_v12 }
  0x6f   : > { %v3730_v44 = vadd.s32 88, %v3586_v12  ;;  %v3753_v45 = vadd.s32 96, %v3586_v12  ;;  %v3756_v46 = vadd.s32 104, %v3586_v12  ;;  %v3779_v49 = vadd.s32 112, %v3586_v12 }
  0x70   : > { %v3186_v13 = vtrunc.f32 %v299_v10  ;;  %v3188_v14 = vtrunc.f32 %v300_v11  ;;  %v3787_v50 = vadd.s32 120, %v3586_v12  ;;  %v3811_v53 = vadd.s32 128, %v3586_v12 }
  0x71   : > { %v3819_v54 = vadd.s32 136, %v3586_v12  ;;  %v293_v55 = vadd.f32 8.0, %v289_v51  ;;  %v294_v56 = vadd.f32 8.0, %v290_v52  ;;  %v3840_v57 = vadd.s32 144, %v3586_v12 }
  0x72   : > { %v3588_v15 = vcvt.f32.s32 %v3186_v13  ;;  %v3590_v16 = vcvt.f32.s32 %v3188_v14  ;;  %v3848_v58 = vadd.s32 152, %v3586_v12  ;;  %v3869_v61 = vadd.s32 160, %v3586_v12 }
  0x73   : > { %v297_v59 = vmax.f32 %v293_v55, 0.0  ;;  %v298_v60 = vmax.f32 %v294_v56, 0.0  ;;  %v3877_v62 = vadd.s32 168, %v3586_v12  ;;  %v3898_v1 = vadd.s32 176, %v3586_v12  ;;  %v4135_v55 = vld [vmem:[#allocation5 + $0x10] sm:$0xff]  ;;  %v4155_v56 = vld [vmem:[#allocation5 + $0x28] sm:$0xff] }
  0x74   : > { %v307_v19 = vmul.u32 16, %v3588_v15  ;;  %v2379_v20 = vrot.slane %v3588_v15, 9  ;;  %v308_v21 = vmul.u32 16, %v3590_v16  ;;  %v2380_v22 = vrot.slane %v3590_v16, 9 }
  0x75   : > { %v301_v63 = vmin.f32 %v297_v59, 15.0  ;;  %v302_v0 = vmin.f32 %v298_v60, 15.0  ;;  %v3906_v2 = vadd.s32 184, %v3586_v12  ;;  %v3927_v5 = vadd.s32 192, %v3586_v12 }
  0x76   : > { %v319_v23 = vadd.s32 %v2379_v20, %v307_v19  ;;  %v320_v24 = vadd.s32 %v2380_v22, %v308_v21  ;;  %v3935_v6 = vadd.s32 200, %v3586_v12  ;;  %v3960_v10 = vadd.s32 208, %v3586_v12 }
  0x77   : > { %v3190_v3 = vtrunc.f32 %v301_v63  ;;  %v3192_v4 = vtrunc.f32 %v302_v0  ;;  %v3963_v11 = vadd.s32 216, %v3586_v12  ;;  %v4002_v21 = vadd.s32 224, %v3586_v12 }
  0x78   : > { %v363_v26 = vrot.slane %v319_v23, %v3596_v18  ;;  %v371_v27 = vrot.slane %v320_v24, %v3596_v18  ;;  %v359_v28 = vrot.slane %v319_v23, %v3593_v17  ;;  %v367_v29 = vrot.slane %v320_v24, %v3593_v17 }
  0x79   : > { %v3937_v8 = vcvt.f32.s32 %v3190_v3  ;;  %v3944_v9 = vcvt.f32.s32 %v3192_v4  ;;  %v4010_v22 = vadd.s32 232, %v3586_v12  ;;  %v3419_v0 = vmov 0  }
  0x7a   : > { %v3616_v32 = vrot.slane %v363_v26, %v3593_v17  ;;  %v3619_v33 = vrot.slane %v371_v27, %v3593_v17  ;;  %v3622_v34 = vrot.slane %v359_v28, %v3593_v17  ;;  %v3625_v35 = vrot.slane %v367_v29, %v3593_v17 }
  0x7b   : > { %v309_v13 = vmul.u32 16, %v3937_v8  ;;  %v2381_v14 = vrot.slane %v3937_v8, 9  ;;  %v310_v19 = vmul.u32 16, %v3944_v9  ;;  %v2382_v20 = vrot.slane %v3944_v9, 9 }
  0x7c   : > { %vm421_vm0 = vcmp.eq.s32.totalorder %v3586_v12, %v3616_v32  ;;  %vm429_vm1 = vcmp.eq.s32.totalorder %v3603_v25, %v3616_v32  ;;  %vm423_vm2 = vcmp.eq.s32.totalorder %v3586_v12, %v3619_v33  ;;  %vm431_vm3 = vcmp.eq.s32.totalorder %v3603_v25, %v3619_v33 }
  0x7d   : > { %vm2930_vm4 = vmpackc.low %vm429_vm1, %vm421_vm0  ;;  %vm420_vm5 = vcmp.eq.s32.totalorder %v3586_v12, %v3622_v34  ;;  %vm428_vm6 = vcmp.eq.s32.totalorder %v3603_v25, %v3622_v34  ;;  %vm422_vm7 = vcmp.eq.s32.totalorder %v3586_v12, %v3625_v35  ;;  %vm430_vm8 = vcmp.eq.s32.totalorder %v3603_v25, %v3625_v35 }
  0x7e   : > { %2931 = vmatprep.subr.msk.bf16.mxu0 %vm2930_vm4, %v3418_v36  ;;  %vm2994_vm9 = vmpackc.low %vm431_vm3, %vm423_vm2  ;;  %vm437_vm10 = vcmp.eq.s32.totalorder %v3610_v30, %v3616_v32  ;;  %vm445_vm11 = vcmp.eq.s32.totalorder %v3613_v31, %v3616_v32  ;;  %vm439_vm13 = vcmp.eq.s32.totalorder %v3610_v30, %v3619_v33  ;;  %vm447_vm14 = vcmp.eq.s32.totalorder %v3613_v31, %v3619_v33 }
  0x7f   : > { %2995 = vmatprep.subr.msk.bf16.mxu1 %vm2994_vm9, %v3418_v36  ;;  %vm2932_vm12 = vmpackc.low %vm428_vm6, %vm420_vm5  ;;  %vm436_vm0 = vcmp.eq.s32.totalorder %v3610_v30, %v3622_v34  ;;  %vm444_vm1 = vcmp.eq.s32.totalorder %v3613_v31, %v3622_v34  ;;  %vm438_vm3 = vcmp.eq.s32.totalorder %v3610_v30, %v3625_v35  ;;  %vm446_vm4 = vcmp.eq.s32.totalorder %v3613_v31, %v3625_v35 }
  0x80   : > { %2933 = vmatpush1.bf16.msk.msra.mxu0 %vm2932_vm12, %v3418_v36  ;;  %vm2996_vm15 = vmpackc.low %vm430_vm8, %vm422_vm7  ;;  %vm453_vm6 = vcmp.eq.s32.totalorder %v3649_v37, %v3616_v32  ;;  %vm461_vm7 = vcmp.eq.s32.totalorder %v3652_v38, %v3616_v32  ;;  %vm455_vm9 = vcmp.eq.s32.totalorder %v3649_v37, %v3619_v33  ;;  %vm452_vm12 = vcmp.eq.s32.totalorder %v3649_v37, %v3622_v34 }
  0x81   : > { %2997 = vmatpush1.bf16.msk.msra.mxu1 %vm2996_vm15, %v3418_v36  ;;  %vm2934_vm2 = vmpackc.low %vm445_vm11, %vm437_vm10  ;;  %vm463_vm10 = vcmp.eq.s32.totalorder %v3652_v38, %v3619_v33  ;;  %vm454_vm15 = vcmp.eq.s32.totalorder %v3649_v37, %v3625_v35  ;;  %v321_v23 = vadd.s32 %v2381_v14, %v309_v13  ;;  %v322_v24 = vadd.s32 %v2382_v20, %v310_v19 }
  0x82   : > { %2935 = vmatprep.subr.msk.bf16.mxu0 %vm2934_vm2, %v3418_v36  ;;  %vm2998_vm5 = vmpackc.low %vm447_vm14, %vm439_vm13  ;;  %vm460_vm13 = vcmp.eq.s32.totalorder %v3652_v38, %v3622_v34  ;;  %vm469_vm2 = vcmp.eq.s32.totalorder %v3675_v39, %v3616_v32  ;;  %v4031_v26 = vadd.s32 240, %v3586_v12  ;;  %v4039_v27 = vadd.s32 248, %v3586_v12 }
  0x83   : > { %2999 = vmatprep.subr.msk.bf16.mxu1 %vm2998_vm5, %v3418_v36  ;;  %vm2936_vm8 = vmpackc.low %vm444_vm1, %vm436_vm0  ;;  %vm462_vm0 = vcmp.eq.s32.totalorder %v3652_v38, %v3625_v35  ;;  %vm471_vm5 = vcmp.eq.s32.totalorder %v3675_v39, %v3619_v33  ;;  %v379_v28 = vrot.slane %v321_v23, %v3596_v18  ;;  %v387_v29 = vrot.slane %v322_v24, %v3596_v18 }
  0x84   : > { %2937 = vmatpush1.bf16.msk.msra.mxu0 %vm2936_vm8, %v3418_v36  ;;  %vm3000_vm11 = vmpackc.low %vm446_vm4, %vm438_vm3  ;;  %vm477_vm3 = vcmp.eq.s32.totalorder %v3678_v40, %v3616_v32  ;;  %vm468_vm8 = vcmp.eq.s32.totalorder %v3675_v39, %v3622_v34  ;;  %v375_v47 = vrot.slane %v321_v23, %v3593_v17  ;;  %v383_v48 = vrot.slane %v322_v24, %v3593_v17 }
  0x85   : > { %3001 = vmatpush1.bf16.msk.msra.mxu1 %vm3000_vm11, %v3418_v36  ;;  %vm2938_vm14 = vmpackc.low %vm461_vm7, %vm453_vm6  ;;  %vm479_vm6 = vcmp.eq.s32.totalorder %v3678_v40, %v3619_v33  ;;  %vm470_vm11 = vcmp.eq.s32.totalorder %v3675_v39, %v3625_v35  ;;  %v4072_v51 = vrot.slane %v379_v28, %v3593_v17  ;;  %v4080_v52 = vrot.slane %v387_v29, %v3593_v17 }
  0x86   : > { %2939 = vmatprep.subr.msk.bf16.mxu0 %vm2938_vm14, %v3418_v36  ;;  %vm3002_vm1 = vmpackc.low %vm463_vm10, %vm455_vm9  ;;  %vm476_vm9 = vcmp.eq.s32.totalorder %v3678_v40, %v3622_v34  ;;  %vm485_vm14 = vcmp.eq.s32.totalorder %v3701_v41, %v3616_v32 }
  0x87   : > { %3003 = vmatprep.subr.msk.bf16.mxu1 %vm3002_vm1, %v3418_v36  ;;  %vm2940_vm4 = vmpackc.low %vm460_vm13, %vm452_vm12  ;;  %vm478_vm12 = vcmp.eq.s32.totalorder %v3678_v40, %v3625_v35  ;;  %vm487_vm1 = vcmp.eq.s32.totalorder %v3701_v41, %v3619_v33 }
  0x88   : > { %2941 = vmatpush1.bf16.msk.msra.mxu0 %vm2940_vm4, %v3418_v36  ;;  %vm3004_vm7 = vmpackc.low %vm462_vm0, %vm454_vm15  ;;  %vm493_vm15 = vcmp.eq.s32.totalorder %v3704_v42, %v3616_v32  ;;  %vm484_vm4 = vcmp.eq.s32.totalorder %v3701_v41, %v3622_v34 }
  0x89   : > { %3005 = vmatpush1.bf16.msk.msra.mxu1 %vm3004_vm7, %v3418_v36  ;;  %vm2942_vm10 = vmpackc.low %vm477_vm3, %vm469_vm2  ;;  %vm495_vm2 = vcmp.eq.s32.totalorder %v3704_v42, %v3619_v33  ;;  %vm486_vm7 = vcmp.eq.s32.totalorder %v3701_v41, %v3625_v35 }
  0x8a   : > { %2943 = vmatprep.subr.msk.bf16.mxu0 %vm2942_vm10, %v3418_v36  ;;  %vm3006_vm13 = vmpackc.low %vm479_vm6, %vm471_vm5  ;;  %vm492_vm5 = vcmp.eq.s32.totalorder %v3704_v42, %v3622_v34  ;;  %vm501_vm10 = vcmp.eq.s32.totalorder %v3727_v43, %v3616_v32 }
  0x8b   : > { %3007 = vmatprep.subr.msk.bf16.mxu1 %vm3006_vm13, %v3418_v36  ;;  %vm2944_vm0 = vmpackc.low %vm476_vm9, %vm468_vm8  ;;  %vm494_vm8 = vcmp.eq.s32.totalorder %v3704_v42, %v3625_v35  ;;  %vm503_vm13 = vcmp.eq.s32.totalorder %v3727_v43, %v3619_v33 }
  0x8c   : > { %2945 = vmatpush1.bf16.msk.msra.mxu0 %vm2944_vm0, %v3418_v36  ;;  %vm3008_vm3 = vmpackc.low %vm478_vm12, %vm470_vm11  ;;  %vm509_vm11 = vcmp.eq.s32.totalorder %v3730_v44, %v3616_v32  ;;  %vm500_vm0 = vcmp.eq.s32.totalorder %v3727_v43, %v3622_v34 }
  0x8d   : > { %3009 = vmatpush1.bf16.msk.msra.mxu1 %vm3008_vm3, %v3418_v36  ;;  %vm2946_vm6 = vmpackc.low %vm493_vm15, %vm485_vm14  ;;  %vm511_vm14 = vcmp.eq.s32.totalorder %v3730_v44, %v3619_v33  ;;  %vm502_vm3 = vcmp.eq.s32.totalorder %v3727_v43, %v3625_v35 }
  0x8e   : > { %2947 = vmatprep.subr.msk.bf16.mxu0 %vm2946_vm6, %v3418_v36  ;;  %vm3010_vm9 = vmpackc.low %vm495_vm2, %vm487_vm1  ;;  %vm508_vm1 = vcmp.eq.s32.totalorder %v3730_v44, %v3622_v34  ;;  %vm517_vm6 = vcmp.eq.s32.totalorder %v3753_v45, %v3616_v32 }
  0x8f   : > { %3011 = vmatprep.subr.msk.bf16.mxu1 %vm3010_vm9, %v3418_v36  ;;  %vm2948_vm12 = vmpackc.low %vm492_vm5, %vm484_vm4  ;;  %vm510_vm4 = vcmp.eq.s32.totalorder %v3730_v44, %v3625_v35  ;;  %vm519_vm9 = vcmp.eq.s32.totalorder %v3753_v45, %v3619_v33 }
  0x90   : > { %2949 = vmatpush1.bf16.msk.msra.mxu0 %vm2948_vm12, %v3418_v36  ;;  %vm3012_vm15 = vmpackc.low %vm494_vm8, %vm486_vm7  ;;  %vm525_vm7 = vcmp.eq.s32.totalorder %v3756_v46, %v3616_v32  ;;  %vm516_vm12 = vcmp.eq.s32.totalorder %v3753_v45, %v3622_v34 }
  0x91   : > { %3013 = vmatpush1.bf16.msk.msra.mxu1 %vm3012_vm15, %v3418_v36  ;;  %vm2950_vm2 = vmpackc.low %vm509_vm11, %vm501_vm10  ;;  %vm527_vm10 = vcmp.eq.s32.totalorder %v3756_v46, %v3619_v33  ;;  %vm518_vm15 = vcmp.eq.s32.totalorder %v3753_v45, %v3625_v35 }
  0x92   : > { %2951 = vmatprep.subr.msk.bf16.mxu0 %vm2950_vm2, %v3418_v36  ;;  %vm3014_vm5 = vmpackc.low %vm511_vm14, %vm503_vm13  ;;  %vm524_vm13 = vcmp.eq.s32.totalorder %v3756_v46, %v3622_v34  ;;  %vm533_vm2 = vcmp.eq.s32.totalorder %v3779_v49, %v3616_v32 }
  0x93   : > { %3015 = vmatprep.subr.msk.bf16.mxu1 %vm3014_vm5, %v3418_v36  ;;  %vm2952_vm8 = vmpackc.low %vm508_vm1, %vm500_vm0  ;;  %vm526_vm0 = vcmp.eq.s32.totalorder %v3756_v46, %v3625_v35  ;;  %vm535_vm5 = vcmp.eq.s32.totalorder %v3779_v49, %v3619_v33 }
  0x94   : > { %2953 = vmatpush1.bf16.msk.msra.mxu0 %vm2952_vm8, %v3418_v36  ;;  %vm3016_vm11 = vmpackc.low %vm510_vm4, %vm502_vm3  ;;  %vm541_vm3 = vcmp.eq.s32.totalorder %v3787_v50, %v3616_v32  ;;  %vm532_vm8 = vcmp.eq.s32.totalorder %v3779_v49, %v3622_v34 }
  0x95   : > { %3017 = vmatpush1.bf16.msk.msra.mxu1 %vm3016_vm11, %v3418_v36  ;;  %vm2954_vm14 = vmpackc.low %vm525_vm7, %vm517_vm6  ;;  %vm543_vm6 = vcmp.eq.s32.totalorder %v3787_v50, %v3619_v33  ;;  %vm534_vm11 = vcmp.eq.s32.totalorder %v3779_v49, %v3625_v35 }
  0x96   : > { %2955 = vmatprep.subr.msk.bf16.mxu0 %vm2954_vm14, %v3418_v36  ;;  %vm3018_vm1 = vmpackc.low %vm527_vm10, %vm519_vm9  ;;  %vm540_vm9 = vcmp.eq.s32.totalorder %v3787_v50, %v3622_v34  ;;  %vm549_vm14 = vcmp.eq.s32.totalorder %v3811_v53, %v3616_v32 }
  0x97   : > { %3019 = vmatprep.subr.msk.bf16.mxu1 %vm3018_vm1, %v3418_v36  ;;  %vm2956_vm4 = vmpackc.low %vm524_vm13, %vm516_vm12  ;;  %vm542_vm12 = vcmp.eq.s32.totalorder %v3787_v50, %v3625_v35  ;;  %vm551_vm1 = vcmp.eq.s32.totalorder %v3811_v53, %v3619_v33 }
  0x98   : > { %2957 = vmatpush1.bf16.msk.msra.mxu0 %vm2956_vm4, %v3418_v36  ;;  %vm3020_vm7 = vmpackc.low %vm526_vm0, %vm518_vm15  ;;  %vm557_vm15 = vcmp.eq.s32.totalorder %v3819_v54, %v3616_v32  ;;  %vm548_vm4 = vcmp.eq.s32.totalorder %v3811_v53, %v3622_v34 }
  0x99   : > { %3021 = vmatpush1.bf16.msk.msra.mxu1 %vm3020_vm7, %v3418_v36  ;;  %vm2958_vm10 = vmpackc.low %vm541_vm3, %vm533_vm2  ;;  %vm559_vm2 = vcmp.eq.s32.totalorder %v3819_v54, %v3619_v33  ;;  %vm550_vm7 = vcmp.eq.s32.totalorder %v3811_v53, %v3625_v35 }
  0x9a   : > { %2959 = vmatprep.subr.msk.bf16.mxu0 %vm2958_vm10, %v3418_v36  ;;  %vm3022_vm13 = vmpackc.low %vm543_vm6, %vm535_vm5  ;;  %vm556_vm5 = vcmp.eq.s32.totalorder %v3819_v54, %v3622_v34  ;;  %vm565_vm10 = vcmp.eq.s32.totalorder %v3840_v57, %v3616_v32 }
  0x9b   : > { %3023 = vmatprep.subr.msk.bf16.mxu1 %vm3022_vm13, %v3418_v36  ;;  %vm2960_vm0 = vmpackc.low %vm540_vm9, %vm532_vm8  ;;  %vm558_vm8 = vcmp.eq.s32.totalorder %v3819_v54, %v3625_v35  ;;  %vm567_vm13 = vcmp.eq.s32.totalorder %v3840_v57, %v3619_v33 }
  0x9c   : > { %2961 = vmatpush1.bf16.msk.msra.mxu0 %vm2960_vm0, %v3418_v36  ;;  %vm3024_vm3 = vmpackc.low %vm542_vm12, %vm534_vm11  ;;  %vm573_vm11 = vcmp.eq.s32.totalorder %v3848_v58, %v3616_v32  ;;  %vm564_vm0 = vcmp.eq.s32.totalorder %v3840_v57, %v3622_v34 }
  0x9d   : > { %3025 = vmatpush1.bf16.msk.msra.mxu1 %vm3024_vm3, %v3418_v36  ;;  %vm2962_vm6 = vmpackc.low %vm557_vm15, %vm549_vm14  ;;  %vm575_vm14 = vcmp.eq.s32.totalorder %v3848_v58, %v3619_v33  ;;  %vm566_vm3 = vcmp.eq.s32.totalorder %v3840_v57, %v3625_v35 }
  0x9e   : > { %2963 = vmatprep.subr.msk.bf16.mxu0 %vm2962_vm6, %v3418_v36  ;;  %vm3026_vm9 = vmpackc.low %vm559_vm2, %vm551_vm1  ;;  %vm572_vm1 = vcmp.eq.s32.totalorder %v3848_v58, %v3622_v34  ;;  %vm581_vm6 = vcmp.eq.s32.totalorder %v3869_v61, %v3616_v32 }
  0x9f   : > { %3027 = vmatprep.subr.msk.bf16.mxu1 %vm3026_vm9, %v3418_v36  ;;  %vm2964_vm12 = vmpackc.low %vm556_vm5, %vm548_vm4  ;;  %vm574_vm4 = vcmp.eq.s32.totalorder %v3848_v58, %v3625_v35  ;;  %vm583_vm9 = vcmp.eq.s32.totalorder %v3869_v61, %v3619_v33 }
  0xa0   : > { %2965 = vmatpush1.bf16.msk.msra.mxu0 %vm2964_vm12, %v3418_v36  ;;  %vm3028_vm15 = vmpackc.low %vm558_vm8, %vm550_vm7  ;;  %vm589_vm7 = vcmp.eq.s32.totalorder %v3877_v62, %v3616_v32  ;;  %vm580_vm12 = vcmp.eq.s32.totalorder %v3869_v61, %v3622_v34 }
  0xa1   : > { %3029 = vmatpush1.bf16.msk.msra.mxu1 %vm3028_vm15, %v3418_v36  ;;  %vm2966_vm2 = vmpackc.low %vm573_vm11, %vm565_vm10  ;;  %vm591_vm10 = vcmp.eq.s32.totalorder %v3877_v62, %v3619_v33  ;;  %vm582_vm15 = vcmp.eq.s32.totalorder %v3869_v61, %v3625_v35 }
  0xa2   : > { %2967 = vmatprep.subr.msk.bf16.mxu0 %vm2966_vm2, %v3418_v36  ;;  %vm3030_vm5 = vmpackc.low %vm575_vm14, %vm567_vm13  ;;  %vm588_vm13 = vcmp.eq.s32.totalorder %v3877_v62, %v3622_v34  ;;  %vm597_vm2 = vcmp.eq.s32.totalorder %v3898_v1, %v3616_v32 }
  0xa3   : > { %3031 = vmatprep.subr.msk.bf16.mxu1 %vm3030_vm5, %v3418_v36  ;;  %vm2968_vm8 = vmpackc.low %vm572_vm1, %vm564_vm0  ;;  %vm590_vm0 = vcmp.eq.s32.totalorder %v3877_v62, %v3625_v35  ;;  %vm599_vm5 = vcmp.eq.s32.totalorder %v3898_v1, %v3619_v33 }
  0xa4   : > { %2969 = vmatpush1.bf16.msk.msra.mxu0 %vm2968_vm8, %v3418_v36  ;;  %vm3032_vm11 = vmpackc.low %vm574_vm4, %vm566_vm3  ;;  %vm605_vm3 = vcmp.eq.s32.totalorder %v3906_v2, %v3616_v32  ;;  %vm596_vm8 = vcmp.eq.s32.totalorder %v3898_v1, %v3622_v34 }
  0xa5   : > { %3033 = vmatpush1.bf16.msk.msra.mxu1 %vm3032_vm11, %v3418_v36  ;;  %vm2970_vm14 = vmpackc.low %vm589_vm7, %vm581_vm6  ;;  %vm607_vm6 = vcmp.eq.s32.totalorder %v3906_v2, %v3619_v33  ;;  %vm598_vm11 = vcmp.eq.s32.totalorder %v3898_v1, %v3625_v35 }
  0xa6   : > { %2971 = vmatprep.subr.msk.bf16.mxu0 %vm2970_vm14, %v3418_v36  ;;  %vm3034_vm1 = vmpackc.low %vm591_vm10, %vm583_vm9  ;;  %vm604_vm9 = vcmp.eq.s32.totalorder %v3906_v2, %v3622_v34  ;;  %vm613_vm14 = vcmp.eq.s32.totalorder %v3927_v5, %v3616_v32 }
  0xa7   : > { %3035 = vmatprep.subr.msk.bf16.mxu1 %vm3034_vm1, %v3418_v36  ;;  %vm2972_vm4 = vmpackc.low %vm588_vm13, %vm580_vm12  ;;  %vm606_vm12 = vcmp.eq.s32.totalorder %v3906_v2, %v3625_v35  ;;  %vm615_vm1 = vcmp.eq.s32.totalorder %v3927_v5, %v3619_v33 }
  0xa8   : > { %2973 = vmatpush1.bf16.msk.msra.mxu0 %vm2972_vm4, %v3418_v36  ;;  %vm3036_vm7 = vmpackc.low %vm590_vm0, %vm582_vm15  ;;  %vm621_vm15 = vcmp.eq.s32.totalorder %v3935_v6, %v3616_v32  ;;  %vm612_vm4 = vcmp.eq.s32.totalorder %v3927_v5, %v3622_v34 }
  0xa9   : > { %3037 = vmatpush1.bf16.msk.msra.mxu1 %vm3036_vm7, %v3418_v36  ;;  %vm2974_vm10 = vmpackc.low %vm605_vm3, %vm597_vm2  ;;  %vm623_vm2 = vcmp.eq.s32.totalorder %v3935_v6, %v3619_v33  ;;  %vm614_vm7 = vcmp.eq.s32.totalorder %v3927_v5, %v3625_v35 }
  0xaa   : > { %2975 = vmatprep.subr.msk.bf16.mxu0 %vm2974_vm10, %v3418_v36  ;;  %vm3038_vm13 = vmpackc.low %vm607_vm6, %vm599_vm5  ;;  %vm620_vm5 = vcmp.eq.s32.totalorder %v3935_v6, %v3622_v34  ;;  %vm629_vm10 = vcmp.eq.s32.totalorder %v3960_v10, %v3616_v32 }
  0xab   : > { %3039 = vmatprep.subr.msk.bf16.mxu1 %vm3038_vm13, %v3418_v36  ;;  %vm2976_vm0 = vmpackc.low %vm604_vm9, %vm596_vm8  ;;  %vm622_vm8 = vcmp.eq.s32.totalorder %v3935_v6, %v3625_v35  ;;  %vm631_vm13 = vcmp.eq.s32.totalorder %v3960_v10, %v3619_v33 }
  0xac   : > { %2977 = vmatpush1.bf16.msk.msra.mxu0 %vm2976_vm0, %v3418_v36  ;;  %vm3040_vm3 = vmpackc.low %vm606_vm12, %vm598_vm11  ;;  %vm637_vm11 = vcmp.eq.s32.totalorder %v3963_v11, %v3616_v32  ;;  %vm628_vm0 = vcmp.eq.s32.totalorder %v3960_v10, %v3622_v34 }
  0xad   : > { %3041 = vmatpush1.bf16.msk.msra.mxu1 %vm3040_vm3, %v3418_v36  ;;  %vm2978_vm6 = vmpackc.low %vm621_vm15, %vm613_vm14  ;;  %vm639_vm14 = vcmp.eq.s32.totalorder %v3963_v11, %v3619_v33  ;;  %vm630_vm3 = vcmp.eq.s32.totalorder %v3960_v10, %v3625_v35 }
  0xae   : > { %2979 = vmatprep.subr.msk.bf16.mxu0 %vm2978_vm6, %v3418_v36  ;;  %vm3042_vm9 = vmpackc.low %vm623_vm2, %vm615_vm1  ;;  %vm636_vm1 = vcmp.eq.s32.totalorder %v3963_v11, %v3622_v34  ;;  %vm645_vm6 = vcmp.eq.s32.totalorder %v4002_v21, %v3616_v32 }
  0xaf   : > { %3043 = vmatprep.subr.msk.bf16.mxu1 %vm3042_vm9, %v3418_v36  ;;  %vm2980_vm12 = vmpackc.low %vm620_vm5, %vm612_vm4  ;;  %vm638_vm4 = vcmp.eq.s32.totalorder %v3963_v11, %v3625_v35  ;;  %vm647_vm9 = vcmp.eq.s32.totalorder %v4002_v21, %v3619_v33 }
  0xb0   : > { %2981 = vmatpush1.bf16.msk.msra.mxu0 %vm2980_vm12, %v3418_v36  ;;  %vm3044_vm15 = vmpackc.low %vm622_vm8, %vm614_vm7  ;;  %vm653_vm7 = vcmp.eq.s32.totalorder %v4010_v22, %v3616_v32  ;;  %vm644_vm12 = vcmp.eq.s32.totalorder %v4002_v21, %v3622_v34 }
  0xb1   : > { %3045 = vmatpush1.bf16.msk.msra.mxu1 %vm3044_vm15, %v3418_v36  ;;  %vm2982_vm2 = vmpackc.low %vm637_vm11, %vm629_vm10  ;;  %vm655_vm10 = vcmp.eq.s32.totalorder %v4010_v22, %v3619_v33  ;;  %vm646_vm15 = vcmp.eq.s32.totalorder %v4002_v21, %v3625_v35 }
  0xb2   : > { %2983 = vmatprep.subr.msk.bf16.mxu0 %vm2982_vm2, %v3418_v36  ;;  %vm3046_vm5 = vmpackc.low %vm639_vm14, %vm631_vm13  ;;  %vm652_vm13 = vcmp.eq.s32.totalorder %v4010_v22, %v3622_v34  ;;  %vm661_vm2 = vcmp.eq.s32.totalorder %v4031_v26, %v3616_v32 }
  0xb3   : > { %3047 = vmatprep.subr.msk.bf16.mxu1 %vm3046_vm5, %v3418_v36  ;;  %vm2984_vm8 = vmpackc.low %vm636_vm1, %vm628_vm0  ;;  %vm654_vm0 = vcmp.eq.s32.totalorder %v4010_v22, %v3625_v35  ;;  %vm663_vm5 = vcmp.eq.s32.totalorder %v4031_v26, %v3619_v33 }
  0xb4   : > { %2985 = vmatpush1.bf16.msk.msra.mxu0 %vm2984_vm8, %v3418_v36  ;;  %vm3048_vm11 = vmpackc.low %vm638_vm4, %vm630_vm3  ;;  %vm669_vm3 = vcmp.eq.s32.totalorder %v4039_v27, %v3616_v32  ;;  %vm660_vm8 = vcmp.eq.s32.totalorder %v4031_v26, %v3622_v34  ;;  %v4088_v32 = vrot.slane %v375_v47, %v3593_v17 }
  0xb5   : > { %3049 = vmatpush1.bf16.msk.msra.mxu1 %vm3048_vm11, %v3418_v36  ;;  %vm2986_vm14 = vmpackc.low %vm653_vm7, %vm645_vm6  ;;  %vm671_vm6 = vcmp.eq.s32.totalorder %v4039_v27, %v3619_v33  ;;  %vm662_vm11 = vcmp.eq.s32.totalorder %v4031_v26, %v3625_v35  ;;  %v4096_v33 = vrot.slane %v383_v48, %v3593_v17 }
  0xb6   : > { %2987 = vmatprep.subr.msk.bf16.mxu0 %vm2986_vm14, %v3418_v36  ;;  %vm3050_vm1 = vmpackc.low %vm655_vm10, %vm647_vm9  ;;  %vm668_vm9 = vcmp.eq.s32.totalorder %v4039_v27, %v3622_v34  ;;  %vm425_vm14 = vcmp.eq.s32.totalorder %v3586_v12, %v4072_v51  ;;  %v4109_v34 = vld [vmem:[#allocation5] sm:$0xff] }
  0xb7   : > { %3051 = vmatprep.subr.msk.bf16.mxu1 %vm3050_vm1, %v3418_v36  ;;  %vm2988_vm4 = vmpackc.low %vm652_vm13, %vm644_vm12  ;;  %vm670_vm12 = vcmp.eq.s32.totalorder %v4039_v27, %v3625_v35  ;;  %vm427_vm1 = vcmp.eq.s32.totalorder %v3586_v12, %v4080_v52  ;;  %v4121_v35 = vld [vmem:[#allocation5 + $0x18] sm:$0xff] }
  0xb8   : > { %2989 = vmatpush1.bf16.msk.msra.mxu0 %vm2988_vm4, %v3418_v36  ;;  %vm3052_vm7 = vmpackc.low %vm654_vm0, %vm646_vm15  ;;  %vm433_vm15 = vcmp.eq.s32.totalorder %v3603_v25, %v4072_v51  ;;  %vm424_vm4 = vcmp.eq.s32.totalorder %v3586_v12, %v4088_v32 }
  0xb9   : > { %3053 = vmatpush1.bf16.msk.msra.mxu1 %vm3052_vm7, %v3418_v36  ;;  %vm2990_vm10 = vmpackc.low %vm669_vm3, %vm661_vm2  ;;  %vm435_vm2 = vcmp.eq.s32.totalorder %v3603_v25, %v4080_v52  ;;  %vm426_vm7 = vcmp.eq.s32.totalorder %v3586_v12, %v4096_v33 }
  0xba   : > { %2991 = vmatprep.subr.msk.bf16.mxu0 %vm2990_vm10, %v3418_v36  ;;  %vm3054_vm13 = vmpackc.low %vm671_vm6, %vm663_vm5  ;;  %vm432_vm5 = vcmp.eq.s32.totalorder %v3603_v25, %v4088_v32  ;;  %vm441_vm10 = vcmp.eq.s32.totalorder %v3610_v30, %v4072_v51 }
  0xbb   : > { %3055 = vmatprep.subr.msk.bf16.mxu1 %vm3054_vm13, %v3418_v36  ;;  %vm2992_vm0 = vmpackc.low %vm668_vm9, %vm660_vm8  ;;  %vm434_vm8 = vcmp.eq.s32.totalorder %v3603_v25, %v4096_v33  ;;  %vm443_vm13 = vcmp.eq.s32.totalorder %v3610_v30, %v4080_v52 }
  0xbc   : > { %2993 = vmatpush1.bf16.msk.msra.mxu0 %vm2992_vm0, %v3418_v36  ;;  %vm3056_vm3 = vmpackc.low %vm670_vm12, %vm662_vm11  ;;  %vm449_vm11 = vcmp.eq.s32.totalorder %v3613_v31, %v4072_v51  ;;  %vm440_vm0 = vcmp.eq.s32.totalorder %v3610_v30, %v4088_v32 }
  0xbd   : > { %3057 = vmatpush1.bf16.msk.msra.mxu1 %vm3056_vm3, %v3418_v36  ;;  %vm3058_vm6 = vmpackc.low %vm433_vm15, %vm425_vm14  ;;  %vm451_vm14 = vcmp.eq.s32.totalorder %v3613_v31, %v4080_v52  ;;  %vm442_vm3 = vcmp.eq.s32.totalorder %v3610_v30, %v4096_v33  ;;  %v4195_v30 = vld [vmem:[#allocation5 + $0x38] sm:$0xff] }
  0xbe   : > { %3059 = vmatprep.subr.msk.bf16.mxu0 %vm3058_vm6, %v3418_v36  ;;  %vm3122_vm9 = vmpackc.low %vm435_vm2, %vm427_vm1  ;;  %vm448_vm1 = vcmp.eq.s32.totalorder %v3613_v31, %v4088_v32  ;;  %vm457_vm6 = vcmp.eq.s32.totalorder %v3649_v37, %v4072_v51 }
  0xbf   : > { %1269 = vmatmul.mubr.f32.vlgmr.msra.gmra.mrb[0].mxu0 %v4109_v34  ;;  %3123 = vmatprep.subr.msk.bf16.mxu1 %vm3122_vm9, %v3418_v36  ;;  %vm3060_vm12 = vmpackc.low %vm432_vm5, %vm424_vm4  ;;  %vm450_vm4 = vcmp.eq.s32.totalorder %v3613_v31, %v4096_v33  ;;  %vm459_vm9 = vcmp.eq.s32.totalorder %v3649_v37, %v4080_v52  ;;  %v4175_v31 = vld [vmem:[#allocation5 + $0x20] sm:$0xff] }
  0xc0   : > { %1382 = vmatmul.mubr.f32.vlgmr.msra.gmra.mrb[0].mxu1 %v4109_v34  ;;  %3061 = vmatpush1.bf16.msk.msra.mxu0 %vm3060_vm12, %v3418_v36  ;;  %vm3124_vm15 = vmpackc.low %vm434_vm8, %vm426_vm7  ;;  %vm465_vm7 = vcmp.eq.s32.totalorder %v3652_v38, %v4072_v51  ;;  %vm456_vm12 = vcmp.eq.s32.totalorder %v3649_v37, %v4088_v32 }
  0xc1   : > { %3125 = vmatpush1.bf16.msk.msra.mxu1 %vm3124_vm15, %v3418_v36  ;;  %1274 = vmatprep.mubr.f32.mxu0 %v4121_v35  ;;  %vm3062_vm2 = vmpackc.low %vm449_vm11, %vm441_vm10  ;;  %vm467_vm10 = vcmp.eq.s32.totalorder %v3652_v38, %v4080_v52  ;;  %vm458_vm15 = vcmp.eq.s32.totalorder %v3649_v37, %v4096_v33  ;;  %v4235_v37 = vld [vmem:[#allocation5 + $0x48] sm:$0xff] }
  0xc2   : > { %1387 = vmatprep.mubr.f32.mxu1 %v4121_v35  ;;  %3063 = vmatprep.subr.msk.bf16.mxu0 %vm3062_vm2, %v3418_v36  ;;  %vm3126_vm5 = vmpackc.low %vm451_vm14, %vm443_vm13  ;;  %vm464_vm13 = vcmp.eq.s32.totalorder %v3652_v38, %v4088_v32  ;;  %vm473_vm2 = vcmp.eq.s32.totalorder %v3675_v39, %v4072_v51 }
  0xc3   : > { %1275 = vmatmul.mubr.f32.gmra.mrb[2].mxu0 %v4135_v55  ;;  %3127 = vmatprep.subr.msk.bf16.mxu1 %vm3126_vm5, %v3418_v36  ;;  %vm3064_vm8 = vmpackc.low %vm448_vm1, %vm440_vm0  ;;  %vm466_vm0 = vcmp.eq.s32.totalorder %v3652_v38, %v4096_v33  ;;  %vm475_vm5 = vcmp.eq.s32.totalorder %v3675_v39, %v4080_v52  ;;  %v4215_v38 = vld [vmem:[#allocation5 + $0x30] sm:$0xff] }
  0xc4   : > { %1388 = vmatmul.mubr.f32.gmra.mrb[2].mxu1 %v4135_v55  ;;  %3065 = vmatpush1.bf16.msk.msra.mxu0 %vm3064_vm8, %v3418_v36  ;;  %vm3128_vm11 = vmpackc.low %vm450_vm4, %vm442_vm3  ;;  %vm481_vm3 = vcmp.eq.s32.totalorder %v3678_v40, %v4072_v51  ;;  %vm472_vm8 = vcmp.eq.s32.totalorder %v3675_v39, %v4088_v32 }
  0xc5   : > { %3129 = vmatpush1.bf16.msk.msra.mxu1 %vm3128_vm11, %v3418_v36  ;;  %1280 = vmatprep.mubr.f32.mxu0 %v4155_v56  ;;  %vm3066_vm14 = vmpackc.low %vm465_vm7, %vm457_vm6  ;;  %vm483_vm6 = vcmp.eq.s32.totalorder %v3678_v40, %v4080_v52  ;;  %vm474_vm11 = vcmp.eq.s32.totalorder %v3675_v39, %v4096_v33  ;;  %v4275_v39 = vld [vmem:[#allocation5 + $0x58] sm:$0xff] }
  0xc6   : > { %1393 = vmatprep.mubr.f32.mxu1 %v4155_v56  ;;  %3067 = vmatprep.subr.msk.bf16.mxu0 %vm3066_vm14, %v3418_v36  ;;  %vm3130_vm1 = vmpackc.low %vm467_vm10, %vm459_vm9  ;;  %vm480_vm9 = vcmp.eq.s32.totalorder %v3678_v40, %v4088_v32  ;;  %vm489_vm14 = vcmp.eq.s32.totalorder %v3701_v41, %v4072_v51 }
  0xc7   : > { %1281 = vmatmul.mubr.f32.gmra.mrb[4].mxu0 %v4175_v31  ;;  %3131 = vmatprep.subr.msk.bf16.mxu1 %vm3130_vm1, %v3418_v36  ;;  %vm3068_vm4 = vmpackc.low %vm464_vm13, %vm456_vm12  ;;  %vm482_vm12 = vcmp.eq.s32.totalorder %v3678_v40, %v4096_v33  ;;  %vm491_vm1 = vcmp.eq.s32.totalorder %v3701_v41, %v4080_v52  ;;  %v4255_v40 = vld [vmem:[#allocation5 + $0x40] sm:$0xff] }
  0xc8   : > { %1394 = vmatmul.mubr.f32.gmra.mrb[4].mxu1 %v4175_v31  ;;  %3069 = vmatpush1.bf16.msk.msra.mxu0 %vm3068_vm4, %v3418_v36  ;;  %vm3132_vm7 = vmpackc.low %vm466_vm0, %vm458_vm15  ;;  %vm497_vm15 = vcmp.eq.s32.totalorder %v3704_v42, %v4072_v51  ;;  %vm488_vm4 = vcmp.eq.s32.totalorder %v3701_v41, %v4088_v32 }
  0xc9   : > { %3133 = vmatpush1.bf16.msk.msra.mxu1 %vm3132_vm7, %v3418_v36  ;;  %1286 = vmatprep.mubr.f32.mxu0 %v4195_v30  ;;  %vm3070_vm10 = vmpackc.low %vm481_vm3, %vm473_vm2  ;;  %vm499_vm2 = vcmp.eq.s32.totalorder %v3704_v42, %v4080_v52  ;;  %vm490_vm7 = vcmp.eq.s32.totalorder %v3701_v41, %v4096_v33  ;;  %v4315_v41 = vld [vmem:[#allocation5 + $0x68] sm:$0xff] }
  0xca   : > { %1399 = vmatprep.mubr.f32.mxu1 %v4195_v30  ;;  %3071 = vmatprep.subr.msk.bf16.mxu0 %vm3070_vm10, %v3418_v36  ;;  %vm3134_vm13 = vmpackc.low %vm483_vm6, %vm475_vm5  ;;  %vm496_vm5 = vcmp.eq.s32.totalorder %v3704_v42, %v4088_v32  ;;  %vm505_vm10 = vcmp.eq.s32.totalorder %v3727_v43, %v4072_v51 }
  0xcb   : > { %1287 = vmatmul.mubr.f32.gmra.mrb[6].mxu0 %v4215_v38  ;;  %3135 = vmatprep.subr.msk.bf16.mxu1 %vm3134_vm13, %v3418_v36  ;;  %vm3072_vm0 = vmpackc.low %vm480_vm9, %vm472_vm8  ;;  %vm498_vm8 = vcmp.eq.s32.totalorder %v3704_v42, %v4096_v33  ;;  %vm507_vm13 = vcmp.eq.s32.totalorder %v3727_v43, %v4080_v52  ;;  %v4295_v42 = vld [vmem:[#allocation5 + $0x50] sm:$0xff] }
  0xcc   : > { %1400 = vmatmul.mubr.f32.gmra.mrb[6].mxu1 %v4215_v38  ;;  %3073 = vmatpush1.bf16.msk.msra.mxu0 %vm3072_vm0, %v3418_v36  ;;  %vm3136_vm3 = vmpackc.low %vm482_vm12, %vm474_vm11  ;;  %vm513_vm11 = vcmp.eq.s32.totalorder %v3730_v44, %v4072_v51  ;;  %vm504_vm0 = vcmp.eq.s32.totalorder %v3727_v43, %v4088_v32 }
  0xcd   : > { %3137 = vmatpush1.bf16.msk.msra.mxu1 %vm3136_vm3, %v3418_v36  ;;  %1292 = vmatprep.mubr.f32.mxu0 %v4235_v37  ;;  %vm3074_vm6 = vmpackc.low %vm497_vm15, %vm489_vm14  ;;  %vm515_vm14 = vcmp.eq.s32.totalorder %v3730_v44, %v4080_v52  ;;  %vm506_vm3 = vcmp.eq.s32.totalorder %v3727_v43, %v4096_v33  ;;  %v4355_v43 = vld [vmem:[#allocation5 + $0x78] sm:$0xff] }
  0xce   : > { %1405 = vmatprep.mubr.f32.mxu1 %v4235_v37  ;;  %3075 = vmatprep.subr.msk.bf16.mxu0 %vm3074_vm6, %v3418_v36  ;;  %vm3138_vm9 = vmpackc.low %vm499_vm2, %vm491_vm1  ;;  %vm512_vm1 = vcmp.eq.s32.totalorder %v3730_v44, %v4088_v32  ;;  %vm521_vm6 = vcmp.eq.s32.totalorder %v3753_v45, %v4072_v51 }
  0xcf   : > { %1293 = vmatmul.mubr.f32.gmra.mrb[8].mxu0 %v4255_v40  ;;  %3139 = vmatprep.subr.msk.bf16.mxu1 %vm3138_vm9, %v3418_v36  ;;  %vm3076_vm12 = vmpackc.low %vm496_vm5, %vm488_vm4  ;;  %vm514_vm4 = vcmp.eq.s32.totalorder %v3730_v44, %v4096_v33  ;;  %vm523_vm9 = vcmp.eq.s32.totalorder %v3753_v45, %v4080_v52  ;;  %v4335_v44 = vld [vmem:[#allocation5 + $0x60] sm:$0xff] }
  0xd0   : > { %1406 = vmatmul.mubr.f32.gmra.mrb[8].mxu1 %v4255_v40  ;;  %3077 = vmatpush1.bf16.msk.msra.mxu0 %vm3076_vm12, %v3418_v36  ;;  %vm3140_vm15 = vmpackc.low %vm498_vm8, %vm490_vm7  ;;  %vm529_vm7 = vcmp.eq.s32.totalorder %v3756_v46, %v4072_v51  ;;  %vm520_vm12 = vcmp.eq.s32.totalorder %v3753_v45, %v4088_v32 }
  0xd1   : > { %3141 = vmatpush1.bf16.msk.msra.mxu1 %vm3140_vm15, %v3418_v36  ;;  %1298 = vmatprep.mubr.f32.mxu0 %v4275_v39  ;;  %vm3078_vm2 = vmpackc.low %vm513_vm11, %vm505_vm10  ;;  %vm531_vm10 = vcmp.eq.s32.totalorder %v3756_v46, %v4080_v52  ;;  %vm522_vm15 = vcmp.eq.s32.totalorder %v3753_v45, %v4096_v33  ;;  %v3281_v45 = vld [vmem:[#allocation5 + $0x8] sm:$0xff] }
  0xd2   : > { %1411 = vmatprep.mubr.f32.mxu1 %v4275_v39  ;;  %3079 = vmatprep.subr.msk.bf16.mxu0 %vm3078_vm2, %v3418_v36  ;;  %vm3142_vm5 = vmpackc.low %vm515_vm14, %vm507_vm13  ;;  %vm528_vm13 = vcmp.eq.s32.totalorder %v3756_v46, %v4088_v32  ;;  %vm537_vm2 = vcmp.eq.s32.totalorder %v3779_v49, %v4072_v51 }
  0xd3   : > { %1299 = vmatmul.mubr.f32.gmra.mrb[10].mxu0 %v4295_v42  ;;  %3143 = vmatprep.subr.msk.bf16.mxu1 %vm3142_vm5, %v3418_v36  ;;  %vm3080_vm8 = vmpackc.low %vm512_vm1, %vm504_vm0  ;;  %vm530_vm0 = vcmp.eq.s32.totalorder %v3756_v46, %v4096_v33  ;;  %vm539_vm5 = vcmp.eq.s32.totalorder %v3779_v49, %v4080_v52  ;;  %v4375_v46 = vld [vmem:[#allocation5 + $0x70] sm:$0xff] }
  0xd4   : > { %1412 = vmatmul.mubr.f32.gmra.mrb[10].mxu1 %v4295_v42  ;;  %3081 = vmatpush1.bf16.msk.msra.mxu0 %vm3080_vm8, %v3418_v36  ;;  %vm3144_vm11 = vmpackc.low %vm514_vm4, %vm506_vm3  ;;  %vm545_vm3 = vcmp.eq.s32.totalorder %v3787_v50, %v4072_v51  ;;  %vm536_vm8 = vcmp.eq.s32.totalorder %v3779_v49, %v4088_v32 }
  0xd5   : > { %3145 = vmatpush1.bf16.msk.msra.mxu1 %vm3144_vm11, %v3418_v36  ;;  %1304 = vmatprep.mubr.f32.mxu0 %v4315_v41  ;;  %vm3082_vm14 = vmpackc.low %vm529_vm7, %vm521_vm6  ;;  %vm547_vm6 = vcmp.eq.s32.totalorder %v3787_v50, %v4080_v52  ;;  %vm538_vm11 = vcmp.eq.s32.totalorder %v3779_v49, %v4096_v33  ;;  %v3282_v49 = vld [vmem:[%s3573_s7] sm:$0x77] }
  0xd6   : > { %1417 = vmatprep.mubr.f32.mxu1 %v4315_v41  ;;  %3083 = vmatprep.subr.msk.bf16.mxu0 %vm3082_vm14, %v3418_v36  ;;  %vm3146_vm1 = vmpackc.low %vm531_vm10, %vm523_vm9  ;;  %vm544_vm9 = vcmp.eq.s32.totalorder %v3787_v50, %v4088_v32  ;;  %vm553_vm14 = vcmp.eq.s32.totalorder %v3811_v53, %v4072_v51 }
  0xd7   : > { %1305 = vmatmul.mubr.f32.gmra.mrb[12].mxu0 %v4335_v44  ;;  %3147 = vmatprep.subr.msk.bf16.mxu1 %vm3146_vm1, %v3418_v36  ;;  %vm3084_vm4 = vmpackc.low %vm528_vm13, %vm520_vm12  ;;  %vm546_vm12 = vcmp.eq.s32.totalorder %v3787_v50, %v4096_v33  ;;  %vm555_vm1 = vcmp.eq.s32.totalorder %v3811_v53, %v4080_v52  ;;  %v214_v50 = vand.u32 2147483647, %v3282_v49 }
  0xd8   : > { %1418 = vmatmul.mubr.f32.gmra.mrb[12].mxu1 %v4335_v44  ;;  %3085 = vmatpush1.bf16.msk.msra.mxu0 %vm3084_vm4, %v3418_v36  ;;  %vm3148_vm7 = vmpackc.low %vm530_vm0, %vm522_vm15  ;;  %vm561_vm15 = vcmp.eq.s32.totalorder %v3819_v54, %v4072_v51  ;;  %vm552_vm4 = vcmp.eq.s32.totalorder %v3811_v53, %v4088_v32 }
  0xd9   : > { %3149 = vmatpush1.bf16.msk.msra.mxu1 %vm3148_vm7, %v3418_v36  ;;  %1310 = vmatprep.mubr.f32.mxu0 %v4355_v43  ;;  %vm3086_vm10 = vmpackc.low %vm545_vm3, %vm537_vm2  ;;  %vm563_vm2 = vcmp.eq.s32.totalorder %v3819_v54, %v4080_v52  ;;  %vm554_vm7 = vcmp.eq.s32.totalorder %v3811_v53, %v4096_v33  ;;  %v3283_v53 = vld [vmem:[%s3573_s7 + $0x8] sm:$0x77] }
  0xda   : > { %1423 = vmatprep.mubr.f32.mxu1 %v4355_v43  ;;  %3087 = vmatprep.subr.msk.bf16.mxu0 %vm3086_vm10, %v3418_v36  ;;  %vm3150_vm13 = vmpackc.low %vm547_vm6, %vm539_vm5  ;;  %vm560_vm5 = vcmp.eq.s32.totalorder %v3819_v54, %v4088_v32  ;;  %vm569_vm10 = vcmp.eq.s32.totalorder %v3840_v57, %v4072_v51 }
  0xdb   : > { %1311 = vmatmul.mubr.f32.gmra.mrb[14].mxu0 %v4375_v46  ;;  %3151 = vmatprep.subr.msk.bf16.mxu1 %vm3150_vm13, %v3418_v36  ;;  %vm3088_vm0 = vmpackc.low %vm544_vm9, %vm536_vm8  ;;  %vm562_vm8 = vcmp.eq.s32.totalorder %v3819_v54, %v4096_v33  ;;  %vm571_vm13 = vcmp.eq.s32.totalorder %v3840_v57, %v4080_v52  ;;  %v215_v54 = vand.u32 2147483647, %v3283_v53 }
  0xdc   : > { %1424 = vmatmul.mubr.f32.gmra.mrb[14].mxu1 %v4375_v46  ;;  %3089 = vmatpush1.bf16.msk.msra.mxu0 %vm3088_vm0, %v3418_v36  ;;  %vm3152_vm3 = vmpackc.low %vm546_vm12, %vm538_vm11  ;;  %vm577_vm11 = vcmp.eq.s32.totalorder %v3848_v58, %v4072_v51  ;;  %vm568_vm0 = vcmp.eq.s32.totalorder %v3840_v57, %v4088_v32 }
  0xdd   : > { %3153 = vmatpush1.bf16.msk.msra.mxu1 %vm3152_vm3, %v3418_v36  ;;  %vm3090_vm6 = vmpackc.low %vm561_vm15, %vm553_vm14  ;;  %1494 = vmatprep.mubr.f32.mxu0 %v3281_v45  ;;  %vm579_vm14 = vcmp.eq.s32.totalorder %v3848_v58, %v4080_v52  ;;  %vm570_vm3 = vcmp.eq.s32.totalorder %v3840_v57, %v4096_v33 }
  0xde   : > { %3091 = vmatprep.subr.msk.bf16.mxu0 %vm3090_vm6, %v3418_v36  ;;  %vm3154_vm9 = vmpackc.low %vm563_vm2, %vm555_vm1  ;;  %1607 = vmatprep.mubr.f32.mxu1 %v3281_v45  ;;  %vm576_vm1 = vcmp.eq.s32.totalorder %v3848_v58, %v4088_v32  ;;  %vm585_vm6 = vcmp.eq.s32.totalorder %v3869_v61, %v4072_v51 }
  0xdf   : > { %3155 = vmatprep.subr.msk.bf16.mxu1 %vm3154_vm9, %v3418_v36  ;;  %vm3092_vm12 = vmpackc.low %vm560_vm5, %vm552_vm4  ;;  %vm578_vm4 = vcmp.eq.s32.totalorder %v3848_v58, %v4096_v33  ;;  %vm587_vm9 = vcmp.eq.s32.totalorder %v3869_v61, %v4080_v52  ;;  %v4597_v58 = vstv %s2370_s20 }
  0xe0   : > { %3093 = vmatpush1.bf16.msk.msra.mxu0 %vm3092_vm12, %v3418_v36  ;;  %vm3156_vm15 = vmpackc.low %vm562_vm8, %vm554_vm7  ;;  %vm593_vm7 = vcmp.eq.s32.totalorder %v3877_v62, %v4072_v51  ;;  %vm584_vm12 = vcmp.eq.s32.totalorder %v3869_v61, %v4088_v32 }
  0xe1   : > { %3157 = vmatpush1.bf16.msk.msra.mxu1 %vm3156_vm15, %v3418_v36  ;;  %vm3094_vm2 = vmpackc.low %vm577_vm11, %vm569_vm10  ;;  %vm595_vm10 = vcmp.eq.s32.totalorder %v3877_v62, %v4080_v52  ;;  %vm586_vm15 = vcmp.eq.s32.totalorder %v3869_v61, %v4096_v33 }
  0xe2   : > { %3095 = vmatprep.subr.msk.bf16.mxu0 %vm3094_vm2, %v3418_v36  ;;  %vm3158_vm5 = vmpackc.low %vm579_vm14, %vm571_vm13  ;;  %vm592_vm13 = vcmp.eq.s32.totalorder %v3877_v62, %v4088_v32  ;;  %vm601_vm2 = vcmp.eq.s32.totalorder %v3898_v1, %v4072_v51 }
  0xe3   : > { %3159 = vmatprep.subr.msk.bf16.mxu1 %vm3158_vm5, %v3418_v36  ;;  %vm3096_vm8 = vmpackc.low %vm576_vm1, %vm568_vm0  ;;  %vm594_vm0 = vcmp.eq.s32.totalorder %v3877_v62, %v4096_v33  ;;  %vm603_vm5 = vcmp.eq.s32.totalorder %v3898_v1, %v4080_v52 }
  0xe4   : > { %3097 = vmatpush1.bf16.msk.msra.mxu0 %vm3096_vm8, %v3418_v36  ;;  %vm3160_vm11 = vmpackc.low %vm578_vm4, %vm570_vm3  ;;  %vm609_vm3 = vcmp.eq.s32.totalorder %v3906_v2, %v4072_v51  ;;  %vm600_vm8 = vcmp.eq.s32.totalorder %v3898_v1, %v4088_v32 }
  0xe5   : > { %3161 = vmatpush1.bf16.msk.msra.mxu1 %vm3160_vm11, %v3418_v36  ;;  %vm3098_vm14 = vmpackc.low %vm593_vm7, %vm585_vm6  ;;  %vm611_vm6 = vcmp.eq.s32.totalorder %v3906_v2, %v4080_v52  ;;  %vm602_vm11 = vcmp.eq.s32.totalorder %v3898_v1, %v4096_v33 }
  0xe6   : > { %3099 = vmatprep.subr.msk.bf16.mxu0 %vm3098_vm14, %v3418_v36  ;;  %vm3162_vm1 = vmpackc.low %vm595_vm10, %vm587_vm9  ;;  %vm608_vm9 = vcmp.eq.s32.totalorder %v3906_v2, %v4088_v32  ;;  %vm617_vm14 = vcmp.eq.s32.totalorder %v3927_v5, %v4072_v51 }
  0xe7   : > { %3163 = vmatprep.subr.msk.bf16.mxu1 %vm3162_vm1, %v3418_v36  ;;  %vm3100_vm4 = vmpackc.low %vm592_vm13, %vm584_vm12  ;;  %vm610_vm12 = vcmp.eq.s32.totalorder %v3906_v2, %v4096_v33  ;;  %vm619_vm1 = vcmp.eq.s32.totalorder %v3927_v5, %v4080_v52 }
  0xe8   : > { %3101 = vmatpush1.bf16.msk.msra.mxu0 %vm3100_vm4, %v3418_v36  ;;  %vm3164_vm7 = vmpackc.low %vm594_vm0, %vm586_vm15  ;;  %vm625_vm15 = vcmp.eq.s32.totalorder %v3935_v6, %v4072_v51  ;;  %vm616_vm4 = vcmp.eq.s32.totalorder %v3927_v5, %v4088_v32 }
  0xe9   : > { %3165 = vmatpush1.bf16.msk.msra.mxu1 %vm3164_vm7, %v3418_v36  ;;  %vm3102_vm10 = vmpackc.low %vm609_vm3, %vm601_vm2  ;;  %vm627_vm2 = vcmp.eq.s32.totalorder %v3935_v6, %v4080_v52  ;;  %vm618_vm7 = vcmp.eq.s32.totalorder %v3927_v5, %v4096_v33 }
  0xea   : > { %3103 = vmatprep.subr.msk.bf16.mxu0 %vm3102_vm10, %v3418_v36  ;;  %vm3166_vm13 = vmpackc.low %vm611_vm6, %vm603_vm5  ;;  %vm624_vm5 = vcmp.eq.s32.totalorder %v3935_v6, %v4088_v32  ;;  %vm633_vm10 = vcmp.eq.s32.totalorder %v3960_v10, %v4072_v51 }
  0xeb   : > { %3167 = vmatprep.subr.msk.bf16.mxu1 %vm3166_vm13, %v3418_v36  ;;  %vm3104_vm0 = vmpackc.low %vm608_vm9, %vm600_vm8  ;;  %vm626_vm8 = vcmp.eq.s32.totalorder %v3935_v6, %v4096_v33  ;;  %vm635_vm13 = vcmp.eq.s32.totalorder %v3960_v10, %v4080_v52 }
  0xec   : > { %3105 = vmatpush1.bf16.msk.msra.mxu0 %vm3104_vm0, %v3418_v36  ;;  %vm3168_vm3 = vmpackc.low %vm610_vm12, %vm602_vm11  ;;  %vm641_vm11 = vcmp.eq.s32.totalorder %v3963_v11, %v4072_v51  ;;  %vm632_vm0 = vcmp.eq.s32.totalorder %v3960_v10, %v4088_v32 }
  0xed   : > { %3169 = vmatpush1.bf16.msk.msra.mxu1 %vm3168_vm3, %v3418_v36  ;;  %vm3106_vm6 = vmpackc.low %vm625_vm15, %vm617_vm14  ;;  %vm643_vm14 = vcmp.eq.s32.totalorder %v3963_v11, %v4080_v52  ;;  %vm634_vm3 = vcmp.eq.s32.totalorder %v3960_v10, %v4096_v33  ;;  %v4621_v10 = vsub.s32 2, %v3586_v12 }
  0xee   : > { %3107 = vmatprep.subr.msk.bf16.mxu0 %vm3106_vm6, %v3418_v36  ;;  %vm3170_vm9 = vmpackc.low %vm627_vm2, %vm619_vm1  ;;  %vm640_vm1 = vcmp.eq.s32.totalorder %v3963_v11, %v4088_v32  ;;  %vm649_vm6 = vcmp.eq.s32.totalorder %v4002_v21, %v4072_v51 }
  0xef   : > { %3171 = vmatprep.subr.msk.bf16.mxu1 %vm3170_vm9, %v3418_v36  ;;  %vm3108_vm12 = vmpackc.low %vm624_vm5, %vm616_vm4  ;;  %vm642_vm4 = vcmp.eq.s32.totalorder %v3963_v11, %v4096_v33  ;;  %vm651_vm9 = vcmp.eq.s32.totalorder %v4002_v21, %v4080_v52  ;;  %v4624_v11 = vsub.s32 6, %v3586_v12  ;;  %v1667_v28 = vrot.slane %v3590_v16, %v4621_v10 }
  0xf0   : > { %3109 = vmatpush1.bf16.msk.msra.mxu0 %vm3108_vm12, %v3418_v36  ;;  %vm3172_vm15 = vmpackc.low %vm626_vm8, %vm618_vm7  ;;  %vm657_vm7 = vcmp.eq.s32.totalorder %v4010_v22, %v4072_v51  ;;  %vm648_vm12 = vcmp.eq.s32.totalorder %v4002_v21, %v4088_v32 }
  0xf1   : > { %3173 = vmatpush1.bf16.msk.msra.mxu1 %vm3172_vm15, %v3418_v36  ;;  %vm3110_vm2 = vmpackc.low %vm641_vm11, %vm633_vm10  ;;  %vm659_vm10 = vcmp.eq.s32.totalorder %v4010_v22, %v4080_v52  ;;  %vm650_vm15 = vcmp.eq.s32.totalorder %v4002_v21, %v4096_v33  ;;  %v1663_v29 = vrot.slane %v3588_v15, %v4624_v11  ;;  %v1671_v48 = vrot.slane %v3590_v16, %v4624_v11 }
  0xf2   : > { %3111 = vmatprep.subr.msk.bf16.mxu0 %vm3110_vm2, %v3418_v36  ;;  %vm3174_vm5 = vmpackc.low %vm643_vm14, %vm635_vm13  ;;  %vm656_vm13 = vcmp.eq.s32.totalorder %v4010_v22, %v4088_v32  ;;  %vm665_vm2 = vcmp.eq.s32.totalorder %v4031_v26, %v4072_v51 }
  0xf3   : > { %3175 = vmatprep.subr.msk.bf16.mxu1 %vm3174_vm5, %v3418_v36  ;;  %vm3112_vm8 = vmpackc.low %vm640_vm1, %vm632_vm0  ;;  %vm658_vm0 = vcmp.eq.s32.totalorder %v4010_v22, %v4096_v33  ;;  %vm667_vm5 = vcmp.eq.s32.totalorder %v4031_v26, %v4080_v52  ;;  %v1695_v16 = vrot.slane %v1663_v29, %v4621_v10 }
  0xf4   : > { %3113 = vmatpush1.bf16.msk.msra.mxu0 %vm3112_vm8, %v3418_v36  ;;  %vm3176_vm11 = vmpackc.low %vm642_vm4, %vm634_vm3  ;;  %vm673_vm3 = vcmp.eq.s32.totalorder %v4039_v27, %v4072_v51  ;;  %vm664_vm8 = vcmp.eq.s32.totalorder %v4031_v26, %v4088_v32 }
  0xf5   : > { %3177 = vmatpush1.bf16.msk.msra.mxu1 %vm3176_vm11, %v3418_v36  ;;  %vm3114_vm14 = vmpackc.low %vm657_vm7, %vm649_vm6  ;;  %vm675_vm6 = vcmp.eq.s32.totalorder %v4039_v27, %v4080_v52  ;;  %vm666_vm11 = vcmp.eq.s32.totalorder %v4031_v26, %v4096_v33  ;;  %v1659_v26 = vrot.slane %v3588_v15, %v4621_v10 }
  0xf6   : > { %3115 = vmatprep.subr.msk.bf16.mxu0 %vm3114_vm14, %v3418_v36  ;;  %vm3178_vm1 = vmpackc.low %vm659_vm10, %vm651_vm9  ;;  %vm672_vm9 = vcmp.eq.s32.totalorder %v4039_v27, %v4088_v32  ;;  %v1699_v32 = vrot.slane %v1667_v28, %v4621_v10 }
  0xf7   : > { %3179 = vmatprep.subr.msk.bf16.mxu1 %vm3178_vm1, %v3418_v36  ;;  %vm3116_vm4 = vmpackc.low %vm656_vm13, %vm648_vm12  ;;  %vm674_vm12 = vcmp.eq.s32.totalorder %v4039_v27, %v4096_v33  ;;  %vm4605_vm1 = vcmp.lt.f32.partialorder %v215_v54, 0.5  ;;  %v1691_v51 = vrot.slane %v1659_v26, %v4621_v10 }
  0xf8   : > { %3117 = vmatpush1.bf16.msk.msra.mxu0 %vm3116_vm4, %v3418_v36  ;;  %vm3180_vm7 = vmpackc.low %vm658_vm0, %vm650_vm15  ;;  %vm4601_vm0 = vcmp.lt.f32.partialorder %v214_v50, 0.5  ;;  %v223_v4 = vsel %vm4605_vm1, 1, %v3419_v0 }
  0xf9   : > { %3181 = vmatpush1.bf16.msk.msra.mxu1 %vm3180_vm7, %v3418_v36  ;;  %vm3118_vm10 = vmpackc.low %vm673_vm3, %vm665_vm2  ;;  %v222_v1 = vsel %vm4601_vm0, 1, %v3419_v0  ;;  %v2372_v6 = vrot.slane %v223_v4, 9  ;;  %v2376_v21 = vrot.slane %v223_v4, 10 }
  0xfa   : > { %3119 = vmatprep.subr.msk.bf16.mxu0 %vm3118_vm10, %v3418_v36  ;;  %vm3182_vm13 = vmpackc.low %vm675_vm6, %vm667_vm5  ;;  %v2371_v5 = vrot.slane %v222_v1, 9  ;;  %v2375_v13 = vrot.slane %v222_v1, 10 }
  0xfb   : > { %3183 = vmatprep.subr.msk.bf16.mxu1 %vm3182_vm13, %v3418_v36  ;;  %vm3120_vm14 = vmpackc.low %vm672_vm9, %vm664_vm8  ;;  %vm4634_vm7 = vcmp.ne.s32.totalorder %v2372_v6, 0 }
  0xfc   : > { %3121 = vmatpush1.bf16.msk.msra.mxu0 %vm3120_vm14, %v3418_v36  ;;  %vm3184_vm15 = vmpackc.low %vm674_vm12, %vm666_vm11  ;;  %vm4628_vm6 = vcmp.ne.s32.totalorder %v2371_v5, 0  ;;  %vm250_vm9 = vcmp.ne.s32.totalorder %v2375_v13, 0  ;;  %vm251_vm11 = vcmp.ne.s32.totalorder %v2376_v21, 0 }
  0xfd   : > { %3185 = vmatpush1.bf16.msk.msra.mxu1 %vm3184_vm15, %v3418_v36  ;;  %v4591_v36 = vand.u32 127, %v196_v7  ;;  %vm238_vm8 = vmand %vm4601_vm0, %vm4628_vm6  ;;  %vm1730_vm6 = vcmp.eq.s32.totalorder %v3603_v25, %v1699_v32 }
  0xfe   : > { %vm239_vm10 = vmand %vm4605_vm1, %vm4634_vm7  ;;  %vm1720_vm1 = vcmp.eq.s32.totalorder %v3586_v12, %v1691_v51  ;;  %vm1729_vm7 = vcmp.eq.s32.totalorder %v3603_v25, %v1695_v16 }
  0xff   : > { %1495 = vmatmul.mubr.f32.vlgmr.msra.gmra.mrb[16].mxu0 %v4109_v34  ;;  %v198_v57 = vadd.s32 128, %v4591_v36  ;;  %v199_v59 = vadd.s32 256, %v4591_v36  ;;  %v200_v60 = vadd.s32 384, %v4591_v36  ;;  %v206_v62 = vadd.s32 %v4597_v58, %v4591_v36  ;;  %vm4655_vm12 = vmand %vm238_vm8, %vm250_vm9 }
 0x100   : > { %1608 = vmatmul.mubr.f32.vlgmr.msra.gmra.mrb[16].mxu1 %v4109_v34  ;;  %1500 = vmatprep.mubr.f32.mxu0 %v4121_v35  ;;  %vm4665_vm14 = vmand %vm239_vm10, %vm251_vm11  ;;  %vm5112_vm10 = vcmask 1040384   ;;  %vm5111_vm11 = vcmask 1041408  }
 0x101   : > { %1613 = vmatprep.mubr.f32.mxu1 %v4121_v35  ;;  %v207_v63 = vadd.s32 %v4597_v58, %v198_v57  ;;  %v208_v2 = vadd.s32 %v4597_v58, %v199_v59  ;;  %v209_v3 = vadd.s32 %v4597_v58, %v200_v60  ;;  %vm258_vm2 = vcmp.lt.s32.totalorder %v206_v62, 2500 }
 0x102   : > { %v266_v14 = vsel %vm258_vm2, 1, %v3419_v0  ;;  %v1703_v35 = vrot.slane %v1671_v48, %v4621_v10  ;;  %vm1728_vm2 = vcmp.eq.s32.totalorder %v3603_v25, %v1691_v51 }
 0x103   : > { %1501 = vmatmul.mubr.f32.gmra.mrb[18].mxu0 %v4135_v55  ;;  %vm259_vm3 = vcmp.lt.s32.totalorder %v207_v63, 2500  ;;  %vm260_vm4 = vcmp.lt.s32.totalorder %v208_v2, 2500  ;;  %vm261_vm5 = vcmp.lt.s32.totalorder %v209_v3, 2500 }
 0x104   : > { %1614 = vmatmul.mubr.f32.gmra.mrb[18].mxu1 %v4135_v55  ;;  %1506 = vmatprep.mubr.f32.mxu0 %v4155_v56  ;;  %v267_v19 = vsel %vm259_vm3, 1, %v3419_v0  ;;  %v268_v22 = vsel %vm260_vm4, 1, %v3419_v0  ;;  %v269_v23 = vsel %vm261_vm5, 1, %v3419_v0  ;;  %vm1722_vm4 = vcmp.eq.s32.totalorder %v3586_v12, %v1699_v32 }
 0x105   : > { %1619 = vmatprep.mubr.f32.mxu1 %v4155_v56  ;;  %v274_v27 = vcombine.low %v266_v14, %v267_v19  ;;  %v275_v47 = vcombine.low %v268_v22, %v269_v23  ;;  %vm1721_vm5 = vcmp.eq.s32.totalorder %v3586_v12, %v1695_v16  ;;  %vm1723_vm8 = vcmp.eq.s32.totalorder %v3586_v12, %v1703_v35 }
 0x106   : > { %vm1731_vm9 = vcmp.eq.s32.totalorder %v3603_v25, %v1703_v35 }
 0x107   : > { %1507 = vmatmul.mubr.f32.gmra.mrb[20].mxu0 %v4175_v31  ;;  %vm4659_vm13 = vcmp.ne.s32.totalorder %v274_v27, 0  ;;  %vm4669_vm15 = vcmp.ne.s32.totalorder %v275_v47, 0 }
 0x108   : > { %1620 = vmatmul.mubr.f32.gmra.mrb[20].mxu1 %v4175_v31  ;;  %1512 = vmatprep.mubr.f32.mxu0 %v4195_v30  ;;  %vm282_vm0 = vmand %vm4655_vm12, %vm4659_vm13  ;;  %vm5110_vm12 = vcmask 1042432  }
 0x109   : > { %1625 = vmatprep.mubr.f32.mxu1 %v4195_v30  ;;  %vm283_vm3 = vmand %vm4665_vm14, %vm4669_vm15  ;;  %v2083_v30 = vsel %vm282_vm0, 1, %v3419_v0 }
 0x10a   : > { %v2090_v53 = vrot.slane %v2083_v30, %v3593_v17  ;;  %v2094_v7 = vrot.slane %v2083_v30, %v3596_v18 }
 0x10b   : > { %1513 = vmatmul.mubr.f32.gmra.mrb[22].mxu0 %v4215_v38 }
 0x10c   : > { %1626 = vmatmul.mubr.f32.gmra.mrb[22].mxu1 %v4215_v38  ;;  %1518 = vmatprep.mubr.f32.mxu0 %v4235_v37  ;;  %v3420_v38 = vmov 0.0   ;;  %v4729_v26 = vrot.slane %v2090_v53, %v3593_v17  ;;  %v4735_v48 = vrot.slane %v2094_v7, %v3593_v17 }
 0x10d   : > { %1631 = vmatprep.mubr.f32.mxu1 %v4235_v37  ;;  %v4692_v37 = vsel %vm1720_vm1, 1.0, %v3420_v38  ;;  %v4711_v45 = vsel %vm1723_vm8, 1.0, %v3420_v38  ;;  %v4714_v50 = vsel %vm1731_vm9, 1.0, %v3420_v38 }
 0x10e   : > { %vm2151_vm13 = vcmp.eq.s32.totalorder %v4729_v26, 1  ;;  %vm2152_vm15 = vcmp.eq.s32.totalorder %v4735_v48, 1  ;;  %v1679_v48 = vrot.slane %v3937_v8, %v4624_v11 }
 0x10f   : > { %1519 = vmatmul.mubr.f32.gmra.mrb[24].mxu0 %v4255_v40 }
 0x110   : > { %1632 = vmatmul.mubr.f32.gmra.mrb[24].mxu1 %v4255_v40  ;;  %1524 = vmatprep.mubr.f32.mxu0 %v4275_v39 }
 0x111   : > { %1637 = vmatprep.mubr.f32.mxu1 %v4275_v39  ;;  %v4695_v39 = vsel %vm1728_vm2, 1.0, %v3420_v38 }
 0x113   : > { %1525 = vmatmul.mubr.f32.gmra.mrb[26].mxu0 %v4295_v42 }
 0x114   : > { %1638 = vmatmul.mubr.f32.gmra.mrb[26].mxu1 %v4295_v42  ;;  %1530 = vmatprep.mubr.f32.mxu0 %v4315_v41  ;;  %v2084_v42 = vsel %vm283_vm3, 1, %v3419_v0 }
 0x115   : > { %1643 = vmatprep.mubr.f32.mxu1 %v4315_v41  ;;  %v4699_v41 = vsel %vm1722_vm4, 1.0, %v3420_v38  ;;  %v2098_v61 = vrot.slane %v2084_v42, %v3593_v17  ;;  %v2102_v13 = vrot.slane %v2084_v42, %v3596_v18 }
 0x117   : > { %1531 = vmatmul.mubr.f32.gmra.mrb[28].mxu0 %v4335_v44  ;;  %v4732_v47 = vrot.slane %v2098_v61, %v3593_v17  ;;  %v4739_v32 = vrot.slane %v2102_v13, %v3593_v17 }
 0x118   : > { %1644 = vmatmul.mubr.f32.gmra.mrb[28].mxu1 %v4335_v44  ;;  %1536 = vmatprep.mubr.f32.mxu0 %v4355_v43  ;;  %v4702_v44 = vsel %vm1721_vm5, 1.0, %v3420_v38 }
 0x119   : > { %1649 = vmatprep.mubr.f32.mxu1 %v4355_v43  ;;  %v4705_v43 = vsel %vm1730_vm6, 1.0, %v3420_v38  ;;  %vm2153_vm14 = vcmp.eq.s32.totalorder %v4732_v47, 1  ;;  %vm2154_vm0 = vcmp.eq.s32.totalorder %v4739_v32, 1 }
 0x11b   : > { %1537 = vmatmul.mubr.f32.gmra.mrb[30].mxu0 %v4375_v46 }
 0x11c   : > { %1650 = vmatmul.mubr.f32.gmra.mrb[30].mxu1 %v4375_v46  ;;  %v4708_v46 = vsel %vm1729_vm7, 1.0, %v3420_v38 }
 0x192   : > { %v1270_v55 = vpop.f32.mrb[0].mxu0 }
 0x193   : > { %v1383_v56 = vpop.f32.mrb[0].mxu1  ;;  %v1272_v31 = vpop.f32.mrb[1].mxu0  ;;  %v1768_v54 = vmul.f32 %v4692_v37, %v1270_v55 }
 0x194   : > { %v1385_v40 = vpop.f32.mrb[1].mxu1  ;;  %v1770_v62 = vmul.f32 %v4699_v41, %v1383_v56  ;;  %v1769_v63 = vmul.f32 %v4702_v44, %v1272_v31 }
 0x195   : > { %v1771_v4 = vmul.f32 %v4711_v45, %v1385_v40 }
 0x196   : > { %v1276_v49 = vpop.f32.mrb[2].mxu0 }
 0x197   : > { %v1776_v57 = vmul.f32 %v4695_v39, %v1276_v49  ;;  %v1389_v59 = vpop.f32.mrb[2].mxu1  ;;  %v1278_v60 = vpop.f32.mrb[3].mxu0 }
 0x198   : > { %v1778_v1 = vmul.f32 %v4705_v43, %v1389_v59  ;;  %v1777_v2 = vmul.f32 %v4708_v46, %v1278_v60  ;;  %v1391_v3 = vpop.f32.mrb[3].mxu1 }
 0x199   : > { %v1784_v5 = vadd.f32 %v1776_v57, %v1768_v54  ;;  %v1779_v6 = vmul.f32 %v4714_v50, %v1391_v3 }
 0x19a   : > { %v1798_v14 = vadd.f32 %v1778_v1, %v1770_v62  ;;  %v1791_v19 = vadd.f32 %v1777_v2, %v1769_v63  ;;  %v1282_v20 = vpop.f32.mrb[4].mxu0 }
 0x19b   : > { %v1785_v21 = vrot.slane %v1784_v5, 4  ;;  %v1805_v22 = vadd.f32 %v1779_v6, %v1771_v4  ;;  %v1395_v23 = vpop.f32.mrb[4].mxu1  ;;  %v1284_v24 = vpop.f32.mrb[5].mxu0  ;;  %v1840_v52 = vmul.f32 %v4692_v37, %v1282_v20 }
 0x19c   : > { %v1799_v27 = vrot.slane %v1798_v14, 4  ;;  %v1792_v28 = vrot.slane %v1791_v19, 4  ;;  %v1397_v29 = vpop.f32.mrb[5].mxu1  ;;  %v1842_v34 = vmul.f32 %v4699_v41, %v1395_v23  ;;  %v1841_v35 = vmul.f32 %v4702_v44, %v1284_v24 }
 0x19d   : > { %v1786_v51 = vadd.f32 %v1785_v21, %v1784_v5  ;;  %v1806_v15 = vrot.slane %v1805_v22, 4  ;;  %v1843_v30 = vmul.f32 %v4711_v45, %v1397_v29 }
 0x19e   : > { %v1800_v16 = vadd.f32 %v1799_v27, %v1798_v14  ;;  %v1793_v33 = vadd.f32 %v1792_v28, %v1791_v19  ;;  %v1288_v55 = vpop.f32.mrb[6].mxu0 }
 0x19f   : > { %v1787_v56 = vrot.slane %v1786_v51, 2  ;;  %v1807_v31 = vadd.f32 %v1806_v15, %v1805_v22  ;;  %v1848_v40 = vmul.f32 %v4695_v39, %v1288_v55  ;;  %v1401_v42 = vpop.f32.mrb[6].mxu1  ;;  %v1290_v49 = vpop.f32.mrb[7].mxu0 }
 0x1a0   : > { %v1801_v53 = vrot.slane %v1800_v16, 2  ;;  %v1794_v54 = vrot.slane %v1793_v33, 2  ;;  %v1850_v57 = vmul.f32 %v4705_v43, %v1401_v42  ;;  %v1849_v59 = vmul.f32 %v4708_v46, %v1290_v49  ;;  %v1403_v60 = vpop.f32.mrb[7].mxu1 }
 0x1a1   : > { %v1788_v61 = vadd.f32 %v1787_v56, %v1786_v51  ;;  %v1808_v7 = vrot.slane %v1807_v31, 2  ;;  %v1856_v62 = vadd.f32 %v1848_v40, %v1840_v52  ;;  %v1851_v63 = vmul.f32 %v4714_v50, %v1403_v60 }
 0x1a2   : > { %v1802_v1 = vadd.f32 %v1801_v53, %v1800_v16  ;;  %v1795_v2 = vadd.f32 %v1794_v54, %v1793_v33  ;;  %v1870_v3 = vadd.f32 %v1850_v57, %v1842_v34  ;;  %v1863_v4 = vadd.f32 %v1849_v59, %v1841_v35  ;;  %v1294_v5 = vpop.f32.mrb[8].mxu0 }
 0x1a3   : > { %v1789_v6 = vrot.slane %v1788_v61, 1  ;;  %v1809_v13 = vadd.f32 %v1808_v7, %v1807_v31  ;;  %v1857_v14 = vrot.slane %v1856_v62, 4  ;;  %v1877_v19 = vadd.f32 %v1851_v63, %v1843_v30  ;;  %v1407_v20 = vpop.f32.mrb[8].mxu1  ;;  %v1296_v21 = vpop.f32.mrb[9].mxu0 }
 0x1a4   : > { %v1803_v22 = vrot.slane %v1802_v1, 1  ;;  %v1796_v23 = vrot.slane %v1795_v2, 1  ;;  %v1871_v24 = vrot.slane %v1870_v3, 4  ;;  %v1864_v27 = vrot.slane %v1863_v4, 4  ;;  %v1409_v28 = vpop.f32.mrb[9].mxu1 }
 0x1a5   : > { %v1790_v29 = vadd.f32 %v1789_v6, %v1788_v61  ;;  %v1810_v51 = vrot.slane %v1809_v13, 1  ;;  %v1858_v15 = vadd.f32 %v1857_v14, %v1856_v62  ;;  %v1878_v52 = vrot.slane %v1877_v19, 4 }
 0x1a6   : > { %v1804_v16 = vadd.f32 %v1803_v22, %v1802_v1  ;;  %v1797_v33 = vadd.f32 %v1796_v23, %v1795_v2  ;;  %v1872_v34 = vadd.f32 %v1871_v24, %v1870_v3  ;;  %v1865_v35 = vadd.f32 %v1864_v27, %v1863_v4  ;;  %v1300_v55 = vpop.f32.mrb[10].mxu0 }
 0x1a7   : > { %v1811_v56 = vadd.f32 %v1810_v51, %v1809_v13  ;;  %v1859_v31 = vrot.slane %v1858_v15, 2  ;;  %v1879_v30 = vadd.f32 %v1878_v52, %v1877_v19  ;;  %v1912_v40 = vmul.f32 %v4692_v37, %v1294_v5  ;;  %v1413_v42 = vpop.f32.mrb[10].mxu1  ;;  %v1302_v49 = vpop.f32.mrb[11].mxu0 }
 0x1a8   : > { %v1873_v53 = vrot.slane %v1872_v34, 2  ;;  %v1866_v54 = vrot.slane %v1865_v35, 2  ;;  %v1914_v57 = vmul.f32 %v4699_v41, %v1407_v20  ;;  %v1913_v59 = vmul.f32 %v4702_v44, %v1296_v21  ;;  %v1415_v60 = vpop.f32.mrb[11].mxu1 }
 0x1a9   : > { %v1860_v61 = vadd.f32 %v1859_v31, %v1858_v15  ;;  %v1880_v7 = vrot.slane %v1879_v30, 2  ;;  %v1915_v62 = vmul.f32 %v4711_v45, %v1409_v28  ;;  %v1920_v63 = vmul.f32 %v4695_v39, %v1300_v55 }
 0x1aa   : > { %v1874_v1 = vadd.f32 %v1873_v53, %v1872_v34  ;;  %v1867_v2 = vadd.f32 %v1866_v54, %v1865_v35  ;;  %v1922_v3 = vmul.f32 %v4705_v43, %v1413_v42  ;;  %v1921_v4 = vmul.f32 %v4708_v46, %v1302_v49  ;;  %v1306_v5 = vpop.f32.mrb[12].mxu0 }
 0x1ab   : > { %v1861_v6 = vrot.slane %v1860_v61, 1  ;;  %v1881_v13 = vadd.f32 %v1880_v7, %v1879_v30  ;;  %v1928_v14 = vadd.f32 %v1920_v63, %v1912_v40  ;;  %v1923_v19 = vmul.f32 %v4714_v50, %v1415_v60  ;;  %v1419_v20 = vpop.f32.mrb[12].mxu1  ;;  %v1308_v21 = vpop.f32.mrb[13].mxu0 }
 0x1ac   : > { %v1875_v22 = vrot.slane %v1874_v1, 1  ;;  %v1868_v23 = vrot.slane %v1867_v2, 1  ;;  %v1942_v24 = vadd.f32 %v1922_v3, %v1914_v57  ;;  %v1935_v27 = vadd.f32 %v1921_v4, %v1913_v59  ;;  %v1421_v28 = vpop.f32.mrb[13].mxu1 }
 0x1ad   : > { %v1862_v51 = vadd.f32 %v1861_v6, %v1860_v61  ;;  %v1882_v15 = vrot.slane %v1881_v13, 1  ;;  %v1929_v52 = vrot.slane %v1928_v14, 4  ;;  %v1949_v34 = vadd.f32 %v1923_v19, %v1915_v62 }
 0x1ae   : > { %v1876_v35 = vadd.f32 %v1875_v22, %v1874_v1  ;;  %v1869_v55 = vadd.f32 %v1868_v23, %v1867_v2  ;;  %v1943_v31 = vrot.slane %v1942_v24, 4  ;;  %v1936_v42 = vrot.slane %v1935_v27, 4  ;;  %v1312_v30 = vpop.f32.mrb[14].mxu0 }
 0x1af   : > { %v2057_v40 = vsel %vm5112_vm10, %v1790_v29, %v1862_v51  ;;  %v1883_v49 = vadd.f32 %v1882_v15, %v1881_v13  ;;  %v1930_v53 = vadd.f32 %v1929_v52, %v1928_v14  ;;  %v1950_v54 = vrot.slane %v1949_v34, 4  ;;  %v1425_v60 = vpop.f32.mrb[14].mxu1  ;;  %v1314_v7 = vpop.f32.mrb[15].mxu0 }
 0x1b0   : > { %v2059_v57 = vsel %vm5112_vm10, %v1804_v16, %v1876_v35  ;;  %v2058_v59 = vsel %vm5112_vm10, %v1797_v33, %v1869_v55  ;;  %v1944_v61 = vadd.f32 %v1943_v31, %v1942_v24  ;;  %v1937_v63 = vadd.f32 %v1936_v42, %v1935_v27  ;;  %v1427_v62 = vpop.f32.mrb[15].mxu1 }
 0x1b1   : > { %v2060_v1 = vsel %vm5112_vm10, %v1811_v56, %v1883_v49  ;;  %v1931_v2 = vrot.slane %v1930_v53, 2  ;;  %v1951_v3 = vadd.f32 %v1950_v54, %v1949_v34  ;;  %v1984_v4 = vmul.f32 %v4692_v37, %v1306_v5 }
 0x1b2   : > { %v1945_v6 = vrot.slane %v1944_v61, 2  ;;  %v1938_v29 = vrot.slane %v1937_v63, 2  ;;  %v1986_v13 = vmul.f32 %v4699_v41, %v1419_v20  ;;  %v1985_v14 = vmul.f32 %v4702_v44, %v1308_v21 }
 0x1b3   : > { %v1932_v19 = vadd.f32 %v1931_v2, %v1930_v53  ;;  %v1952_v22 = vrot.slane %v1951_v3, 2  ;;  %v1987_v16 = vmul.f32 %v4711_v45, %v1421_v28  ;;  %v1992_v33 = vmul.f32 %v4695_v39, %v1312_v30 }
 0x1b4   : > { %v1946_v23 = vadd.f32 %v1945_v6, %v1944_v61  ;;  %v1939_v24 = vadd.f32 %v1938_v29, %v1937_v63  ;;  %v1994_v56 = vmul.f32 %v4705_v43, %v1425_v60  ;;  %v1993_v27 = vmul.f32 %v4708_v46, %v1314_v7 }
 0x1b5   : > { %v1933_v51 = vrot.slane %v1932_v19, 1  ;;  %v1953_v37 = vadd.f32 %v1952_v22, %v1951_v3  ;;  %v2000_v5 = vadd.f32 %v1992_v33, %v1984_v4  ;;  %v1995_v15 = vmul.f32 %v4714_v50, %v1427_v62  ;;  %v3284_v3 = vld [vmem:[%s3573_s7 + $0x10] sm:$0x77] }
 0x1b6   : > { %v1947_v41 = vrot.slane %v1946_v23, 1  ;;  %v1940_v20 = vrot.slane %v1939_v24, 1  ;;  %v2014_v44 = vadd.f32 %v1994_v56, %v1986_v13  ;;  %v2007_v21 = vadd.f32 %v1993_v27, %v1985_v14 }
 0x1b7   : > { %v1934_v52 = vadd.f32 %v1933_v51, %v1932_v19  ;;  %v1954_v34 = vrot.slane %v1953_v37, 1  ;;  %v2001_v45 = vrot.slane %v2000_v5, 4  ;;  %v2021_v28 = vadd.f32 %v1995_v15, %v1987_v16  ;;  %v3285_v16 = vld [vmem:[%s3573_s7 + $0x18] sm:$0x77] }
 0x1b8   : > { %v1948_v39 = vadd.f32 %v1947_v41, %v1946_v23  ;;  %v1941_v35 = vadd.f32 %v1940_v20, %v1939_v24  ;;  %v2015_v55 = vrot.slane %v2014_v44, 4  ;;  %v2008_v31 = vrot.slane %v2007_v21, 4 }
 0x1b9   : > { %v2066_v43 = vsel %vm5111_vm11, %v2057_v40, %v1934_v52  ;;  %v1955_v46 = vadd.f32 %v1954_v34, %v1953_v37  ;;  %v2002_v42 = vadd.f32 %v2001_v45, %v2000_v5  ;;  %v2022_v30 = vrot.slane %v2021_v28, 4 }
 0x1ba   : > { %v2068_v49 = vsel %vm5111_vm11, %v2059_v57, %v1948_v39  ;;  %v2067_v50 = vsel %vm5111_vm11, %v2058_v59, %v1941_v35  ;;  %v2016_v53 = vadd.f32 %v2015_v55, %v2014_v44  ;;  %v2009_v54 = vadd.f32 %v2008_v31, %v2007_v21 }
 0x1bb   : > { %v2069_v60 = vsel %vm5111_vm11, %v2060_v1, %v1955_v46  ;;  %v2003_v7 = vrot.slane %v2002_v42, 2  ;;  %v2023_v61 = vadd.f32 %v2022_v30, %v2021_v28  ;;  %v216_v1 = vand.u32 2147483647, %v3284_v3 }
 0x1bc   : > { %v2017_v63 = vrot.slane %v2016_v53, 2  ;;  %v2010_v62 = vrot.slane %v2009_v54, 2  ;;  %v201_v29 = vadd.s32 512, %v4591_v36  ;;  %v202_v13 = vadd.s32 640, %v4591_v36 }
 0x1bd   : > { %v2004_v40 = vadd.f32 %v2003_v7, %v2002_v42  ;;  %v2024_v57 = vrot.slane %v2023_v61, 2  ;;  %v1675_v22 = vrot.slane %v3937_v8, %v4621_v10  ;;  %v217_v33 = vand.u32 2147483647, %v3285_v16 }
 0x1be   : > { %v2018_v59 = vadd.f32 %v2017_v63, %v2016_v53  ;;  %v2011_v2 = vadd.f32 %v2010_v62, %v2009_v54  ;;  %v1683_v56 = vrot.slane %v3944_v9, %v4621_v10  ;;  %v203_v27 = vadd.s32 768, %v4591_v36 }
 0x1bf   : > { %v2005_v4 = vrot.slane %v2004_v40, 1  ;;  %v2025_v6 = vadd.f32 %v2024_v57, %v2023_v61  ;;  %vm4785_vm1 = vcmp.lt.f32.partialorder %v216_v1, 0.5  ;;  %v204_v15 = vadd.s32 896, %v4591_v36 }
 0x1c0   : > { %v2019_v14 = vrot.slane %v2018_v59, 1  ;;  %v2012_v19 = vrot.slane %v2011_v2, 1  ;;  %v210_v44 = vadd.s32 %v4597_v58, %v201_v29  ;;  %v211_v21 = vadd.s32 %v4597_v58, %v202_v13 }
 0x1c1   : > { %v2006_v23 = vadd.f32 %v2005_v4, %v2004_v40  ;;  %v2026_v24 = vrot.slane %v2025_v6, 1  ;;  %vm4799_vm2 = vcmp.lt.f32.partialorder %v217_v33, 0.5  ;;  %v224_v26 = vsel %vm4785_vm1, 1, %v3419_v0 }
 0x1c2   : > { %v2020_v51 = vadd.f32 %v2019_v14, %v2018_v59  ;;  %v2013_v37 = vadd.f32 %v2012_v19, %v2011_v2  ;;  %v213_v46 = vadd.s32 %v4597_v58, %v204_v15  ;;  %v225_v42 = vsel %vm4799_vm2, 1, %v3419_v0 }
 0x1c3   : > { %v2075_v41 = vsel %vm5110_vm12, %v2066_v43, %v2006_v23  ;;  %v2027_v20 = vadd.f32 %v2026_v24, %v2025_v6  ;;  %v212_v43 = vadd.s32 %v4597_v58, %v203_v27  ;;  %vm262_vm3 = vcmp.lt.s32.totalorder %v210_v44, 2500 }
 0x1c4   : > { %v4795_v52 = vsel %vm2151_vm13, %v2075_v41, 0.0  ;;  %v2077_v34 = vsel %vm5110_vm12, %v2068_v49, %v2020_v51  ;;  %v2076_v45 = vsel %vm5110_vm12, %v2067_v50, %v2013_v37  ;;  %v1707_v49 = vrot.slane %v1675_v22, %v4621_v10 }
 0x1c5   : > { %v2911_v36 = vmul.f32 -1.442695, %v4795_v52  ;;  %v4806_v39 = vsel %vm2153_vm14, %v2077_v34, 0.0  ;;  %v4810_v35 = vsel %vm2152_vm15, %v2076_v45, 0.0  ;;  %v2078_v47 = vsel %vm5110_vm12, %v2069_v60, %v2027_v20 }
 0x1c6   : > { %v2913_v55 = vmul.f32 -1.442695, %v4806_v39  ;;  %v2912_v31 = vmul.f32 -1.442695, %v4810_v35  ;;  %v4827_v30 = vsel %vm2154_vm0, %v2078_v47, 0.0  ;;  %v2373_v50 = vrot.slane %v224_v26, 9 }
 0x1c7   : > { %3249 = vpow2.f32 %v2911_v36  ;;  %v2914_v58 = vmul.f32 -1.442695, %v4827_v30  ;;  %vm263_vm4 = vcmp.lt.s32.totalorder %v211_v21, 2500  ;;  %v1715_v53 = vrot.slane %v1683_v56, %v4621_v10 }
 0x1c8   : > { %3251 = vpow2.f32 %v2913_v55  ;;  %v2374_v8 = vrot.slane %v225_v42, 9  ;;  %vm264_vm5 = vcmp.lt.s32.totalorder %v212_v43, 2500  ;;  %vm265_vm6 = vcmp.lt.s32.totalorder %v213_v46, 2500 }
 0x1c9   : > { %3253 = vpow2.f32 %v2912_v31  ;;  %v1687_v54 = vrot.slane %v3944_v9, %v4624_v11  ;;  %v2377_v32 = vrot.slane %v224_v26, 10  ;;  %v270_v60 = vsel %vm262_vm3, 1, %v3419_v0 }
 0x1ca   : > { %3255 = vpow2.f32 %v2914_v58  ;;  %v271_v7 = vsel %vm263_vm4, 1, %v3419_v0  ;;  %vm4836_vm7 = vcmp.ne.s32.totalorder %v2373_v50, 0  ;;  %v2378_v63 = vrot.slane %v225_v42, 10 }
 0x1cb   : > { %v272_v62 = vsel %vm264_vm5, 1, %v3419_v0  ;;  %v273_v40 = vsel %vm265_vm6, 1, %v3419_v0  ;;  %vm1724_vm8 = vcmp.eq.s32.totalorder %v3586_v12, %v1707_v49  ;;  %vm1726_vm9 = vcmp.eq.s32.totalorder %v3586_v12, %v1715_v53  ;;  %vm240_vm14 = vmand %vm4785_vm1, %vm4836_vm7 }
 0x1cc   : > { %v1711_v9 = vrot.slane %v1679_v48, %v4621_v10  ;;  %vm4845_vm13 = vcmp.ne.s32.totalorder %v2374_v8, 0  ;;  %v1719_v57 = vrot.slane %v1687_v54, %v4621_v10  ;;  %v276_v59 = vcombine.low %v270_v60, %v271_v7 }
 0x1cd   : > { %vm4854_vm15 = vcmp.ne.s32.totalorder %v2377_v32, 0  ;;  %v277_v3 = vcombine.low %v272_v62, %v273_v40  ;;  %v4859_v4 = vsel %vm1724_vm8, 1.0, %v3420_v38  ;;  %v4862_v6 = vsel %vm1726_vm9, 1.0, %v3420_v38  ;;  %vm241_vm3 = vmand %vm4799_vm2, %vm4845_vm13 }
 0x1ce   : > { %vm1732_vm0 = vcmp.eq.s32.totalorder %v3603_v25, %v1707_v49  ;;  %vm4869_vm4 = vcmp.ne.s32.totalorder %v2378_v63, 0  ;;  %vm1725_vm5 = vcmp.eq.s32.totalorder %v3586_v12, %v1711_v9  ;;  %vm1734_vm6 = vcmp.eq.s32.totalorder %v3603_v25, %v1715_v53  ;;  %vm4885_vm11 = vmand %vm240_vm14, %vm4854_vm15 }
 0x1cf   : > { %vm1733_vm8 = vcmp.eq.s32.totalorder %v3603_v25, %v1711_v9  ;;  %vm1727_vm9 = vcmp.eq.s32.totalorder %v3586_v12, %v1719_v57  ;;  %vm1735_vm12 = vcmp.eq.s32.totalorder %v3603_v25, %v1719_v57  ;;  %vm4889_vm10 = vcmp.ne.s32.totalorder %v276_v59, 0  ;;  %vm4905_vm1 = vmand %vm241_vm3, %vm4869_vm4 }
 0x1d0   : > { %v4896_v51 = vsel %vm1732_vm0, 1.0, %v3420_v38  ;;  %vm4909_vm7 = vcmp.ne.s32.totalorder %v277_v3, 0  ;;  %v4916_v41 = vsel %vm1725_vm5, 1.0, %v3420_v38  ;;  %v4921_v20 = vsel %vm1734_vm6, 1.0, %v3420_v38  ;;  %vm284_vm2 = vmand %vm4885_vm11, %vm4889_vm10 }
 0x1d1   : > { %v3250_v1 = vpop.eup %3249  ;;  %v4926_v44 = vsel %vm1733_vm8, 1.0, %v3420_v38  ;;  %v4931_v34 = vsel %vm1727_vm9, 1.0, %v3420_v38  ;;  %v4936_v28 = vsel %vm1735_vm12, 1.0, %v3420_v38  ;;  %vm285_vm13 = vmand %vm4905_vm1, %vm4909_vm7  ;;  %vm2167_vm12 = vcmp.lt.s32.totalorder %v3586_v12, 3 }
 0x1d2   : > { %v3252_v29 = vpop.eup %3251  ;;  %v2192_v13 = vadd.f32 1.0, %v3250_v1  ;;  %v1496_v14 = vpop.f32.mrb[16].mxu0  ;;  %v4961_v8 = vsel %vm284_vm2, 1, %v3419_v0  ;;  %v4964_v54 = vsel %vm285_vm13, 1, %v3419_v0  ;;  %v2216_v32 = vmax.f32 %v4795_v52, 0.0 }
 0x1d3   : > { %v3254_v19 = vpop.eup %3253  ;;  %v2194_v22 = vadd.f32 1.0, %v3252_v29  ;;  %v1609_v16 = vpop.f32.mrb[16].mxu1  ;;  %v1772_v36 = vmul.f32 %v4859_v4, %v1496_v14  ;;  %v2218_v60 = vmax.f32 %v4806_v39, 0.0  ;;  %v2217_v40 = vmax.f32 %v4810_v35, 0.0 }
 0x1d4   : > { %v1498_v33 = vpop.f32.mrb[17].mxu0  ;;  %3257 = vrcp.f32 %v2192_v13  ;;  %v2193_v56 = vadd.f32 1.0, %v3254_v19  ;;  %v1611_v27 = vpop.f32.mrb[17].mxu1  ;;  %v1774_v26 = vmul.f32 %v4862_v6, %v1609_v16  ;;  %v2219_v9 = vmax.f32 %v4827_v30, 0.0 }
 0x1d5   : > { %v3256_v15 = vpop.eup %3255  ;;  %3259 = vrcp.f32 %v2194_v22  ;;  %v1773_v25 = vmul.f32 %v4916_v41, %v1498_v33  ;;  %v1775_v48 = vmul.f32 %v4931_v34, %v1611_v27  ;;  %vm5160_vm10 = vcmask 1040384  }
 0x1d6   : > { %3261 = vrcp.f32 %v2193_v56  ;;  %v2195_v21 = vadd.f32 1.0, %v3256_v15  ;;  %v1502_v45 = vpop.f32.mrb[18].mxu0  ;;  %vm5161_vm11 = vmmov %vm5160_vm10  ;;  %vm5164_vm0 = vcmask 1041408   ;;  %vm5168_vm9 = vcmask 1042432  }
 0x1d7   : > { %v1780_v55 = vmul.f32 %v4896_v51, %v1502_v45  ;;  %v1615_v31 = vpop.f32.mrb[18].mxu1  ;;  %v1504_v43 = vpop.f32.mrb[19].mxu0  ;;  %vm5162_vm14 = vmmov %vm5160_vm10 }
 0x1d8   : > { %3263 = vrcp.f32 %v2195_v21  ;;  %v1782_v38 = vmul.f32 %v4921_v20, %v1615_v31  ;;  %v1781_v46 = vmul.f32 %v4926_v44, %v1504_v43  ;;  %v1617_v47 = vpop.f32.mrb[19].mxu1  ;;  %vm5163_vm15 = vmmov %vm5160_vm10 }
 0x1d9   : > { %v1812_v42 = vadd.f32 %v1780_v55, %v1772_v36  ;;  %v1783_v49 = vmul.f32 %v4936_v28, %v1617_v47  ;;  %vm5165_vm3 = vmmov %vm5164_vm0 }
 0x1da   : > { %v1826_v50 = vadd.f32 %v1782_v38, %v1774_v26  ;;  %v1819_v58 = vadd.f32 %v1781_v46, %v1773_v25  ;;  %v1508_v53 = vpop.f32.mrb[20].mxu0  ;;  %vm5166_vm4 = vmmov %vm5164_vm0 }
 0x1db   : > { %v1813_v7 = vrot.slane %v1812_v42, 4  ;;  %v1833_v61 = vadd.f32 %v1783_v49, %v1775_v48  ;;  %v1621_v63 = vpop.f32.mrb[20].mxu1  ;;  %v1510_v62 = vpop.f32.mrb[21].mxu0  ;;  %v1844_v0 = vmul.f32 %v4859_v4, %v1508_v53  ;;  %vm5167_vm5 = vmmov %vm5164_vm0 }
 0x1dc   : > { %v1827_v11 = vrot.slane %v1826_v50, 4  ;;  %v1820_v57 = vrot.slane %v1819_v58, 4  ;;  %v1623_v59 = vpop.f32.mrb[21].mxu1  ;;  %v1846_v1 = vmul.f32 %v4862_v6, %v1621_v63  ;;  %v1845_v29 = vmul.f32 %v4916_v41, %v1510_v62  ;;  %vm5169_vm7 = vmmov %vm5168_vm9 }
 0x1dd   : > { %v1814_v2 = vadd.f32 %v1813_v7, %v1812_v42  ;;  %v1834_v3 = vrot.slane %v1833_v61, 4  ;;  %v1847_v13 = vmul.f32 %v4931_v34, %v1623_v59  ;;  %vm5170_vm13 = vmmov %vm5169_vm7 }
 0x1de   : > { %v3258_v52 = vpop.eup %3257  ;;  %v1828_v10 = vadd.f32 %v1827_v11, %v1826_v50  ;;  %v1821_v39 = vadd.f32 %v1820_v57, %v1819_v58  ;;  %v1514_v14 = vpop.f32.mrb[22].mxu0 }
 0x1df   : > { %v3260_v35 = vpop.eup %3259  ;;  %v2226_v30 = vsel %vm2167_vm12, %v3258_v52, %v2216_v32  ;;  %v1815_v19 = vrot.slane %v1814_v2, 2  ;;  %v1835_v22 = vadd.f32 %v1834_v3, %v1833_v61  ;;  %v1852_v16 = vmul.f32 %v4896_v51, %v1514_v14  ;;  %v1627_v33 = vpop.f32.mrb[22].mxu1 }
 0x1e0   : > { %v1516_v23 = vpop.f32.mrb[23].mxu0  ;;  %v3262_v24 = vpop.eup %3261  ;;  %v2228_v56 = vsel %vm2167_vm12, %v3260_v35, %v2218_v60  ;;  %v1829_v27 = vrot.slane %v1828_v10, 2  ;;  %v1822_v37 = vrot.slane %v1821_v39, 2  ;;  %v1854_v5 = vmul.f32 %v4921_v20, %v1627_v33 }
 0x1e1   : > { %v1629_v15 = vpop.f32.mrb[23].mxu1  ;;  %v2227_v21 = vsel %vm2167_vm12, %v3262_v24, %v2217_v40  ;;  %v1816_v45 = vadd.f32 %v1815_v19, %v1814_v2  ;;  %v1836_v36 = vrot.slane %v1835_v22, 2  ;;  %v1884_v26 = vadd.f32 %v1852_v16, %v1844_v0 }
 0x1e2   : > { %v3264_v55 = vpop.eup %3263  ;;  %v2242_v31 = vcombine.low %v2226_v30, %v2227_v21  ;;  %v1830_v43 = vadd.f32 %v1829_v27, %v1828_v10  ;;  %v1823_v25 = vadd.f32 %v1822_v37, %v1821_v39  ;;  %v1898_v38 = vadd.f32 %v1854_v5, %v1846_v1  ;;  %v1520_v46 = vpop.f32.mrb[24].mxu0 }
 0x1e3   : > { %v2229_v47 = vsel %vm2167_vm12, %v3264_v55, %v2219_v9  ;;  %v1817_v48 = vrot.slane %v1816_v45, 1  ;;  %v1837_v42 = vadd.f32 %v1836_v36, %v1835_v22  ;;  %v1885_v49 = vrot.slane %v1884_v26, 4  ;;  %v1633_v50 = vpop.f32.mrb[24].mxu1  ;;  %v1522_v58 = vpop.f32.mrb[25].mxu0 }
 0x1e4   : > { %2250 = vst [vmem:[%s4986_s23] sm:$0xff] %v2242_v31  ;;  %v2243_v53 = vcombine.low %v2228_v56, %v2229_v47  ;;  %v1831_v32 = vrot.slane %v1830_v43, 1  ;;  %v1824_v60 = vrot.slane %v1823_v25, 1  ;;  %v1899_v7 = vrot.slane %v1898_v38, 4  ;;  %v1635_v61 = vpop.f32.mrb[25].mxu1 }
 0x1e5   : > { %v1818_v63 = vadd.f32 %v1817_v48, %v1816_v45  ;;  %v1838_v62 = vrot.slane %v1837_v42, 1  ;;  %v1886_v40 = vadd.f32 %v1885_v49, %v1884_v26  ;;  %v1853_v9 = vmul.f32 %v4926_v44, %v1516_v23 }
 0x1e6   : > { %2251 = vst [vmem:[%s4986_s23 + $0x8] sm:$0xff] %v2243_v53  ;;  %v1832_v11 = vadd.f32 %v1831_v32, %v1830_v43  ;;  %v4991_v57 = vadd.f32 %v1824_v60, %v1823_v25  ;;  %v1900_v59 = vadd.f32 %v1899_v7, %v1898_v38  ;;  %v1855_v2 = vmul.f32 %v4936_v28, %v1629_v15  ;;  %v1526_v3 = vpop.f32.mrb[26].mxu0 }
 0x1e7   : > { %v4994_v0 = vadd.f32 %v1838_v62, %v1837_v42  ;;  %v1887_v1 = vrot.slane %v1886_v40, 2  ;;  %v1891_v52 = vadd.f32 %v1853_v9, %v1845_v29  ;;  %v1916_v10 = vmul.f32 %v4859_v4, %v1520_v46  ;;  %v1639_v39 = vpop.f32.mrb[26].mxu1  ;;  %v1528_v14 = vpop.f32.mrb[27].mxu0 }
 0x1e8   : > { %v1901_v35 = vrot.slane %v1900_v59, 2  ;;  %v1905_v30 = vadd.f32 %v1855_v2, %v1847_v13  ;;  %v1918_v19 = vmul.f32 %v4862_v6, %v1633_v50  ;;  %v1917_v22 = vmul.f32 %v4916_v41, %v1522_v58  ;;  %v1641_v16 = vpop.f32.mrb[27].mxu1 }
 0x1e9   : > { %v1888_v33 = vadd.f32 %v1887_v1, %v1886_v40  ;;  %v1892_v23 = vrot.slane %v1891_v52, 4  ;;  %v1919_v24 = vmul.f32 %v4931_v34, %v1635_v61  ;;  %v1924_v56 = vmul.f32 %v4896_v51, %v1526_v3 }
 0x1ea   : > { %v1902_v27 = vadd.f32 %v1901_v35, %v1900_v59  ;;  %v1906_v37 = vrot.slane %v1905_v30, 4  ;;  %v1926_v29 = vmul.f32 %v4921_v20, %v1639_v39  ;;  %v1925_v5 = vmul.f32 %v4926_v44, %v1528_v14  ;;  %v1532_v15 = vpop.f32.mrb[28].mxu0 }
 0x1eb   : > { %v1889_v21 = vrot.slane %v1888_v33, 1  ;;  %v1893_v13 = vadd.f32 %v1892_v23, %v1891_v52  ;;  %v1956_v45 = vadd.f32 %v1924_v56, %v1916_v10  ;;  %v1927_v36 = vmul.f32 %v4936_v28, %v1641_v16  ;;  %v1645_v26 = vpop.f32.mrb[28].mxu1  ;;  %v1534_v55 = vpop.f32.mrb[29].mxu0 }
 0x1ec   : > { %v1903_v31 = vrot.slane %v1902_v27, 1  ;;  %v1907_v43 = vadd.f32 %v1906_v37, %v1905_v30  ;;  %v1970_v25 = vadd.f32 %v1926_v29, %v1918_v19  ;;  %v1963_v38 = vadd.f32 %v1925_v5, %v1917_v22  ;;  %v1647_v46 = vpop.f32.mrb[29].mxu1 }
 0x1ed   : > { %v1890_v47 = vadd.f32 %v1889_v21, %v1888_v33  ;;  %v1894_v48 = vrot.slane %v1893_v13, 2  ;;  %v1957_v42 = vrot.slane %v1956_v45, 4  ;;  %v1977_v49 = vadd.f32 %v1927_v36, %v1919_v24 }
 0x1ee   : > { %v1904_v50 = vadd.f32 %v1903_v31, %v1902_v27  ;;  %v1908_v58 = vrot.slane %v1907_v43, 2  ;;  %v1971_v53 = vrot.slane %v1970_v25, 4  ;;  %v1964_v32 = vrot.slane %v1963_v38, 4  ;;  %v1538_v60 = vpop.f32.mrb[30].mxu0 }
 0x1ef   : > { %v2061_v7 = vsel %vm5160_vm10, %v1818_v63, %v1890_v47  ;;  %v1895_v61 = vadd.f32 %v1894_v48, %v1893_v13  ;;  %v1958_v62 = vadd.f32 %v1957_v42, %v1956_v45  ;;  %v1978_v40 = vrot.slane %v1977_v49, 4  ;;  %v1651_v9 = vpop.f32.mrb[30].mxu1  ;;  %v1540_v59 = vpop.f32.mrb[31].mxu0  ;;  %vm5171_vm10 = vmmov %vm5169_vm7 }
 0x1f0   : > { %v2063_v2 = vsel %vm5161_vm11, %v1832_v11, %v1904_v50  ;;  %v1909_v3 = vadd.f32 %v1908_v58, %v1907_v43  ;;  %v1972_v1 = vadd.f32 %v1971_v53, %v1970_v25  ;;  %v1965_v52 = vadd.f32 %v1964_v32, %v1963_v38  ;;  %v1653_v10 = vpop.f32.mrb[31].mxu1 }
 0x1f1   : > { %v1896_v39 = vrot.slane %v1895_v61, 1  ;;  %v1959_v14 = vrot.slane %v1958_v62, 2  ;;  %v1979_v35 = vadd.f32 %v1978_v40, %v1977_v49  ;;  %v1988_v30 = vmul.f32 %v4859_v4, %v1532_v15 }
 0x1f2   : > { %v1910_v19 = vrot.slane %v1909_v3, 1  ;;  %v1973_v22 = vrot.slane %v1972_v1, 2  ;;  %v1966_v16 = vrot.slane %v1965_v52, 2  ;;  %v1990_v63 = vmul.f32 %v4862_v6, %v1645_v26 }
 0x1f3   : > { %v1897_v33 = vadd.f32 %v1896_v39, %v1895_v61  ;;  %v1960_v23 = vadd.f32 %v1959_v14, %v1958_v62  ;;  %v1980_v24 = vrot.slane %v1979_v35, 2  ;;  %v1989_v56 = vmul.f32 %v4916_v41, %v1534_v55 }
 0x1f4   : > { %v1911_v11 = vadd.f32 %v1910_v19, %v1909_v3  ;;  %v1974_v27 = vadd.f32 %v1973_v22, %v1972_v1  ;;  %v1967_v37 = vadd.f32 %v1966_v16, %v1965_v52  ;;  %v1991_v29 = vmul.f32 %v4931_v34, %v1647_v46 }
 0x1f5   : > { %v2062_v5 = vsel %vm5162_vm14, %v4991_v57, %v1897_v33  ;;  %v1961_v21 = vrot.slane %v1960_v23, 1  ;;  %v1981_v4 = vadd.f32 %v1980_v24, %v1979_v35  ;;  %v1996_v15 = vmul.f32 %v4896_v51, %v1538_v60 }
 0x1f6   : > { %v2064_v6 = vsel %vm5163_vm15, %v4994_v0, %v1911_v11  ;;  %v1975_v13 = vrot.slane %v1974_v27, 1  ;;  %v1968_v45 = vrot.slane %v1967_v37, 1  ;;  %v1998_v36 = vmul.f32 %v4921_v20, %v1651_v9 }
 0x1f7   : > { %v1962_v41 = vadd.f32 %v1961_v21, %v1960_v23  ;;  %v1982_v26 = vrot.slane %v1981_v4, 1  ;;  %v2028_v55 = vadd.f32 %v1996_v15, %v1988_v30  ;;  %v1997_v31 = vmul.f32 %v4926_v44, %v1540_v59 }
 0x1f8   : > { %v1976_v34 = vadd.f32 %v1975_v13, %v1974_v27  ;;  %v1969_v43 = vadd.f32 %v1968_v45, %v1967_v37  ;;  %v2042_v25 = vadd.f32 %v1998_v36, %v1990_v63  ;;  %v1999_v57 = vmul.f32 %v4936_v28, %v1653_v10 }
 0x1f9   : > { %v2070_v38 = vsel %vm5164_vm0, %v2061_v7, %v1962_v41  ;;  %v1983_v51 = vadd.f32 %v1982_v26, %v1981_v4  ;;  %v2029_v46 = vrot.slane %v2028_v55, 4  ;;  %v2035_v47 = vadd.f32 %v1997_v31, %v1989_v56 }
 0x1fa   : > { %v2072_v0 = vsel %vm5165_vm3, %v2063_v2, %v1976_v34  ;;  %v2071_v48 = vsel %vm5166_vm4, %v2062_v5, %v1969_v43  ;;  %v2043_v20 = vrot.slane %v2042_v25, 4  ;;  %v2049_v42 = vadd.f32 %v1999_v57, %v1991_v29 }
 0x1fb   : > { %v2073_v49 = vsel %vm5167_vm5, %v2064_v6, %v1983_v51  ;;  %v2030_v50 = vadd.f32 %v2029_v46, %v2028_v55  ;;  %v2106_v44 = vrot.slane %v4961_v8, %v3593_v17  ;;  %v2036_v58 = vrot.slane %v2035_v47, 4 }
 0x1fc   : > { %v2044_v53 = vadd.f32 %v2043_v20, %v2042_v25  ;;  %v2114_v28 = vrot.slane %v4964_v54, %v3593_v17  ;;  %v2050_v32 = vrot.slane %v2049_v42, 4  ;;  %v2110_v61 = vrot.slane %v4961_v8, %v3596_v18 }
 0x1fd   : > { %v2031_v60 = vrot.slane %v2030_v50, 2  ;;  %v2037_v7 = vadd.f32 %v2036_v58, %v2035_v47  ;;  %v2118_v9 = vrot.slane %v4964_v54, %v3596_v18  ;;  %v2138_v2 = vrot.slane %v2106_v44, %v3593_v17 }
 0x1fe   : > { %v2045_v62 = vrot.slane %v2044_v53, 2  ;;  %v2051_v40 = vadd.f32 %v2050_v32, %v2049_v42  ;;  %v2146_v52 = vrot.slane %v2114_v28, %v3593_v17  ;;  %v2142_v35 = vrot.slane %v2110_v61, %v3593_v17 }
 0x1ff   : > { %v2032_v59 = vadd.f32 %v2031_v60, %v2030_v50  ;;  %v2038_v3 = vrot.slane %v2037_v7, 2  ;;  %v2150_v8 = vrot.slane %v2118_v9, %v3593_v17  ;;  %vm2155_vm6 = vcmp.eq.s32.totalorder %v2138_v2, 1 }
 0x200   : > { %v2046_v1 = vadd.f32 %v2045_v62, %v2044_v53  ;;  %v2052_v10 = vrot.slane %v2051_v40, 2  ;;  %vm2157_vm8 = vcmp.eq.s32.totalorder %v2146_v52, 1  ;;  %vm2156_vm1 = vcmp.eq.s32.totalorder %v2142_v35, 1 }
 0x201   : > { %v2033_v39 = vrot.slane %v2032_v59, 1  ;;  %v2039_v14 = vadd.f32 %v2038_v3, %v2037_v7  ;;  %vm2158_vm2 = vcmp.eq.s32.totalorder %v2150_v8, 1 }
 0x202   : > { %v2047_v30 = vrot.slane %v2046_v1, 1  ;;  %v2053_v19 = vadd.f32 %v2052_v10, %v2051_v40 }
 0x203   : > { %v2034_v22 = vadd.f32 %v2033_v39, %v2032_v59  ;;  %v2040_v16 = vrot.slane %v2039_v14, 1 }
 0x204   : > { %v2048_v18 = vadd.f32 %v2047_v30, %v2046_v1  ;;  %v2054_v54 = vrot.slane %v2053_v19, 1 }
 0x205   : > { %v2079_v63 = vsel %vm5168_vm9, %v2070_v38, %v2034_v22  ;;  %v2041_v33 = vadd.f32 %v2040_v16, %v2039_v14 }
 0x206   : > { %v2163_v23 = vsel %vm2155_vm6, %v2079_v63, 0.0  ;;  %v2081_v24 = vsel %vm5169_vm7, %v2072_v0, %v2048_v18  ;;  %v2055_v56 = vadd.f32 %v2054_v54, %v2053_v19 }
 0x207   : > { %v2915_v11 = vmul.f32 -1.442695, %v2163_v23  ;;  %v2165_v27 = vsel %vm2157_vm8, %v2081_v24, 0.0  ;;  %v2080_v37 = vsel %vm5170_vm13, %v2071_v48, %v2041_v33  ;;  %v2220_v34 = vmax.f32 %v2163_v23, 0.0 }
 0x208   : > { %v2917_v17 = vmul.f32 -1.442695, %v2165_v27  ;;  %v2164_v29 = vsel %vm2156_vm1, %v2080_v37, 0.0  ;;  %v2082_v5 = vsel %vm5171_vm10, %v2073_v49, %v2055_v56  ;;  %v2222_v25 = vmax.f32 %v2165_v27, 0.0 }
 0x209   : > { %3265 = vpow2.f32 %v2915_v11  ;;  %v2916_v21 = vmul.f32 -1.442695, %v2164_v29  ;;  %v2166_v4 = vsel %vm2158_vm2, %v2082_v5, 0.0  ;;  %v2221_v51 = vmax.f32 %v2164_v29, 0.0 }
 0x20a   : > { %3267 = vpow2.f32 %v2917_v17  ;;  %v2918_v15 = vmul.f32 -1.442695, %v2166_v4  ;;  %v2223_v0 = vmax.f32 %v2166_v4, 0.0 }
 0x20b   : > { %3269 = vpow2.f32 %v2916_v21 }
 0x20c   : > { %3271 = vpow2.f32 %v2918_v15 }
 0x213   : > { %v3266_v6 = vpop.eup %3265 }
 0x214   : > { %v3268_v13 = vpop.eup %3267  ;;  %v2196_v45 = vadd.f32 1.0, %v3266_v6 }
 0x215   : > { %v3270_v36 = vpop.eup %3269  ;;  %v2198_v41 = vadd.f32 1.0, %v3268_v13 }
 0x216   : > { %v3272_v26 = vpop.eup %3271  ;;  %3273 = vrcp.f32 %v2196_v45  ;;  %v2197_v55 = vadd.f32 1.0, %v3270_v36 }
 0x217   : > { %3275 = vrcp.f32 %v2198_v41  ;;  %v2199_v31 = vadd.f32 1.0, %v3272_v26 }
 0x218   : > { %3277 = vrcp.f32 %v2197_v55 }
 0x219   : > { %3279 = vrcp.f32 %v2199_v31 }
 0x220   : > { %v3274_v43 = vpop.eup %3273 }
 0x221   : > { %v3276_v57 = vpop.eup %3275  ;;  %v2230_v38 = vsel %vm2167_vm12, %v3274_v43, %v2220_v34  ;;  %2261 = sbr.rel (!%p5172_p8) target bundleno = 579 (0x243), region = 40 }
 0x222   : > { %v3278_v46 = vpop.eup %3277  ;;  %v2232_v47 = vsel %vm2167_vm12, %v3276_v57, %v2222_v25 }
 0x223   : > { %v3280_v48 = vpop.eup %3279  ;;  %v2231_v20 = vsel %vm2167_vm12, %v3278_v46, %v2221_v51 }
 0x224   : > { %v2244_v42 = vcombine.low %v2230_v38, %v2231_v20  ;;  %v2233_v49 = vsel %vm2167_vm12, %v3280_v48, %v2223_v0 }
 0x225   : > { %v2245_v50 = vcombine.low %v2232_v47, %v2233_v49 }
 0x226   : > { %2252 = vst [vmem:[%s4986_s23 + $0x10] sm:$0xff] %v2244_v42 }
 0x227   : > { %2253 = vst [vmem:[%s4986_s23 + $0x18] sm:$0xff] %v2245_v50 }
 0x228   : > { %s5181_s5 = smov (!%p2264_p9, %s2263_s5), 8 }
 0x229   : > { %s5052_s6 = sshll.u32 %s5181_s5, 6 }
 0x22a   : > { %s2268_s8 = ssub.s32 512, %s5052_s6 }
 0x22b   : > { %2269 = vsyncadd %s2255_s29, %s2268_s8  ;;  %p2922_p10 = scmp.ne.s32.totalorder %s5052_s6, 0  ;;  %s2929_s21 = sshll.u32 %s3458_s13, 9 }
 0x22c   : > { %s5062_s17 = scalar_lea.hbm %s5106_s2, %s2929_s21  ;;  %s2275_s24 = sshll.u32 %s4986_s23, 4  ;;  %s2276_s24 = int_to_ptr.vmem [resolvable:$true] %s2275_s24 }
 0x22d   : > { %s3342_s27 = scalar_lea.vmem %s2276_s24, %s5052_s6  ;;  %s3421_s28 = smov [#allocation7]  }
 0x22e   : > { %p3343_p1 = scmp.ne.s32.totalorder %s2276_s24, %s3342_s27  ;;  %s3346_s26 = sshll.u32 %s3421_s28, 4  ;;  %s3347_s26 = int_to_ptr.vmem [resolvable:$false] %s3346_s26 }
 0x22f   : > { %s3348_s25 = scalar_lea.vmem %s3347_s26, 1024  ;;  %p3349_p4 = scmp.lt.s32.totalorder %s2276_s24, %s3347_s26 }
 0x230   : > { %p3344_p0 = pnand %p3343_p1, %p2922_p10  ;;  %p3350_p6 = scmp.lt.s32.totalorder %s3348_s25, %s3342_s27 }
 0x232   : > { %p3345_p7 = pneg %p3344_p0  ;;  %p3351_p11 = por %p3350_p6, %p3349_p4 }
 0x234   : > { %p3352_p2 = pnand %p3351_p11, %p3345_p7 }
 0x236   : > { %3355 = shalt.err (!%p3352_p2)
}
 0x237   : > { %s3356_s13 = scalar_lea.hbm %s5062_s17, %s5052_s6  ;;  %s3360_s7 = scalar_lea.hbm %s5106_s2, 1280 }
 0x238   : > { %p3357_p12 = scmp.ne.s32.totalorder %s5062_s17, %s3356_s13  ;;  %p3361_p3 = scmp.lt.u32.totalorder %s5062_s17, %s5106_s2 }
 0x239   : > { %p3362_p8 = scmp.lt.u32.totalorder %s3360_s7, %s3356_s13  ;;  %p3364_p1 = scmp.lt.u32.totalorder %s3356_s13, %s5062_s17 }
 0x23a   : > { %p3358_p13 = pnand %p3357_p12, %p2922_p10 }
 0x23b   : > { %p3363_p9 = por %p3362_p8, %p3361_p3 }
 0x23c   : > { %p3359_p5 = pneg %p3358_p13 }
 0x23d   : > { %p3365_p0 = por %p3364_p1, %p3363_p9 }
 0x23f   : > { %p3366_p7 = pnand %p3365_p0, %p3359_p5 }
 0x241   : > { %3369 = shalt.err (!%p3366_p7)
}
 0x242   : > { %2278 = dma.vmem_to_hbm [thread:$0]  (%p2922_p10), %s2276_s24, %s5052_s6, %s5062_s17, %s2255_s29  }
 0x243 PF: > { %p3210_p4 = scmp.ge.s32.totalorder %s3412_s12, 2  ;;  %s2287_s30 = sand.u32 1, %s3400_s9  }
 0x244   : > { %p5173_p6 = scmp.ne.s32.totalorder %s5116_s22, 0  ;;  %s2288_s5 = scalar_lea.sflag [#allocation4], %s2287_s30 }
 0x246   : > { %p3205_p11 = pnand %p3210_p4, %p5173_p6 }
 0x248   : > { %3395 = dma.done.wait (!%p3205_p11), %s2288_s5, 512  }
 0x249   : > { %3397 = vsyncadd (!%p3205_p11), %s2288_s5, 4294966784  ;;  %p16_p2 = scmp.ge.s32.totalorder %s3462_s15, 5   ;;  %s5174_s9 = smov %s3404_s10 }
 0x24a   : > { %s5175_s10 = smov %s3408_s11  ;;  %s5176_s11 = smov %s3474_s18 }
 0x24b   : > { %s5177_s12 = smov %s3462_s15  ;;  %18 = sbr.rel (!%p16_p2) target bundleno = 6 (0x6), region = 77 }
 0x252   :  { %2293 = vsyncpa [#allocation3], 1 }
 0x253   :  { %2295 = vsyncpa [#allocation3 + $0x1], 1 }
 0x254   :  { %2296 = vsyncpa [#allocation6], 1 }
 0x255   :  { %2297 = vsyncpa [#allocation4], 1 }
 0x256   :  { %2299 = vsyncpa [#allocation4 + $0x1], 1 }

</bundles_post_ra>
